<compile_context>
chip_gen: v7x
topology: tpu7x:2x2x1
jax: 0.10.0
libtpu: 0.0.40
codegen_flags: <defaults>
</compile_context>

<pallas_src>
import functools

import jax
import jax.numpy as jnp
from jax.experimental import pallas as pl
from jax.experimental.pallas import tpu as pltpu

EPS = 1e-5
VMEM_LIMIT = 32 * 1024 * 1024
MAX_TP = 1024  # rows (N*OH*OW) per conv tile

CONV_CFG = [
    # (cin, cout, kernel, stride, pad)
    (1, 16, 5, 2, 2),
    (16, 32, 3, 2, 1),
    (32, 64, 3, 2, 1),
    (64, 128, 3, 2, 1),
]


def _round_up(x, m):
    return ((x + m - 1) // m) * m


# ----------------------------- Pallas kernels -----------------------------

def conv_relu_stats_kernel(p_ref, w_ref, b_ref, y_ref, s_ref, *, rows_valid, tile_rows):
    # p_ref: (TP, Kpad) bf16 patches, w_ref: (Kpad, Cpad) bf16, b_ref: (1, Cpad) f32
    i = pl.program_id(0)
    y = jnp.dot(p_ref[...], w_ref[...], preferred_element_type=jnp.float32)
    y = jnp.maximum(y + b_ref[...], 0.0)                  # bias + ReLU (before BN)
    y_ref[...] = y.astype(y_ref.dtype)                    # bf16 intermediate
    # Per-tile partial batch-norm statistics (f32, from the pre-cast accumulator);
    # mask rows beyond the true P so zero-padded patch rows never bias mean/var.
    row = i * tile_rows + jax.lax.broadcasted_iota(jnp.int32, y.shape, 0)
    ym = jnp.where(row < rows_valid, y, 0.0)
    colsum = jnp.sum(ym, axis=0, keepdims=True)           # (1, Cpad)
    colsq = jnp.sum(ym * ym, axis=0, keepdims=True)       # (1, Cpad)
    s_ref[...] = jnp.concatenate([colsum, colsq], axis=0)[None]   # (1, 2, Cpad)


def bn_apply_kernel(y_ref, scale_ref, shift_ref, o_ref):
    # y_ref: (TP, Cpad) bf16, scale/shift: (1, Cpad) f32 -> o_ref (TP, Cpad) bf16
    o_ref[...] = (y_ref[...].astype(jnp.float32) * scale_ref[...]
                  + shift_ref[...]).astype(o_ref.dtype)


def head_kernel(x_ref, scale_ref, shift_ref, w_ref, b_ref, o_ref):
    # x_ref: (N, S, C) bf16 pre-BN layer-4 activations.
    # Fused: AdaptiveAvgPool2d(1) + BatchNorm4 (affine on the pooled mean, exact
    # because BN is per-channel affine) + Linear.  Epilogue math in f32.
    x = x_ref[...].astype(jnp.float32)
    pooled = jnp.mean(x, axis=1)                          # (N, C)
    pooled = pooled * scale_ref[...] + shift_ref[...]     # BN4
    o_ref[...] = jnp.dot(pooled, w_ref[...],
                         preferred_element_type=jnp.float32) + b_ref[...]


# ----------------------------- pallas_call wrappers -----------------------------

def conv_relu_stats(patches, w2d, bias, tile_rows, rows_valid):
    p_pad, k_pad = patches.shape
    c_pad = w2d.shape[1]
    nt = p_pad // tile_rows
    kernel = functools.partial(conv_relu_stats_kernel,
                               rows_valid=rows_valid, tile_rows=tile_rows)
    cost = pl.CostEstimate(
        flops=2 * p_pad * k_pad * c_pad,
        transcendentals=0,
        bytes_accessed=p_pad * k_pad * 2 + k_pad * c_pad * 2
        + p_pad * c_pad * 2 + nt * 2 * c_pad * 4,
    )
    return pl.pallas_call(
        kernel,
        out_shape=(
            jax.ShapeDtypeStruct((p_pad, c_pad), jnp.bfloat16),      # y (pre-BN)
            jax.ShapeDtypeStruct((nt, 2, c_pad), jnp.float32),       # per-tile sum/sumsq
        ),
        grid=(nt,),
        in_specs=[
            pl.BlockSpec((tile_rows, k_pad), lambda i: (i, 0)),
            pl.BlockSpec((k_pad, c_pad), lambda i: (0, 0)),
            pl.BlockSpec((1, c_pad), lambda i: (0, 0)),
        ],
        out_specs=(
            pl.BlockSpec((tile_rows, c_pad), lambda i: (i, 0)),
            pl.BlockSpec((1, 2, c_pad), lambda i: (i, 0, 0)),
        ),
        compiler_params=pltpu.CompilerParams(
            dimension_semantics=("parallel",),
            vmem_limit_bytes=VMEM_LIMIT,
        ),
        cost_estimate=cost,
    )(patches, w2d, bias)


def bn_apply(y, scale, shift, tile_rows):
    p_pad, c_pad = y.shape
    nt = p_pad // tile_rows
    return pl.pallas_call(
        bn_apply_kernel,
        out_shape=jax.ShapeDtypeStruct((p_pad, c_pad), jnp.bfloat16),
        grid=(nt,),
        in_specs=[
            pl.BlockSpec((tile_rows, c_pad), lambda i: (i, 0)),
            pl.BlockSpec((1, c_pad), lambda i: (0, 0)),
            pl.BlockSpec((1, c_pad), lambda i: (0, 0)),
        ],
        out_specs=pl.BlockSpec((tile_rows, c_pad), lambda i: (i, 0)),
        compiler_params=pltpu.CompilerParams(
            dimension_semantics=("parallel",),
            vmem_limit_bytes=VMEM_LIMIT,
        ),
    )(y, scale, shift)


def head(x_nsc, scale, shift, w_t, b):
    n, s, c = x_nsc.shape
    co = w_t.shape[1]
    return pl.pallas_call(
        head_kernel,
        out_shape=jax.ShapeDtypeStruct((n, co), jnp.float32),
        grid=(1,),
        in_specs=[
            pl.BlockSpec((n, s, c), lambda i: (0, 0, 0)),
            pl.BlockSpec((1, c), lambda i: (0, 0)),
            pl.BlockSpec((1, c), lambda i: (0, 0)),
            pl.BlockSpec((c, co), lambda i: (0, 0)),
            pl.BlockSpec((1, co), lambda i: (0, 0)),
        ],
        out_specs=pl.BlockSpec((n, co), lambda i: (0, 0)),
        compiler_params=pltpu.CompilerParams(
            dimension_semantics=("arbitrary",),
            vmem_limit_bytes=VMEM_LIMIT,
        ),
    )(x_nsc, scale, shift, w_t, b)


# ----------------------------- plain-JAX glue -----------------------------

def im2col_nhwc(x, kh, kw, sh, sw, ph, pw):
    # x: (N, H, W, C)  ->  patches (N*OH*OW, kh*kw*C), (kh, kw)-major / C-minor.
    n, h, w, c = x.shape
    xp = jnp.pad(x, ((0, 0), (ph, ph), (pw, pw), (0, 0)))
    oh = (h + 2 * ph - kh) // sh + 1
    ow = (w + 2 * pw - kw) // sw + 1
    windows = []
    for i in range(kh):
        for j in range(kw):
            windows.append(xp[:, i:i + sh * oh:sh, j:j + sw * ow:sw, :])  # (N,OH,OW,C)
    p = jnp.stack(windows, axis=3)                        # (N, OH, OW, kh*kw, C)
    p = p.reshape(n * oh * ow, kh * kw * c)
    return p, oh, ow


def conv_relu_pass(x_nhwc, w, b, gamma, beta, k, s, pad, cout):
    """Pass 1 for one conv block: im2col matmul + bias + ReLU (tiled) + batch stats.

    Returns y (p_pad, c_pad) bf16 pre-BN activations, BN scale/shift (c_pad,) f32,
    and geometry needed by the caller."""
    n, _, _, cin = x_nhwc.shape
    patches, oh, ow = im2col_nhwc(x_nhwc.astype(jnp.bfloat16), k, k, s, s, pad, pad)
    p_rows = n * oh * ow
    k_dim = k * k * cin
    k_pad = _round_up(k_dim, 128)
    c_pad = _round_up(cout, 128)
    tile_rows = MAX_TP if p_rows >= MAX_TP else _round_up(p_rows, 16)
    p_pad = _round_up(p_rows, tile_rows)

    patches = jnp.pad(patches, ((0, p_pad - p_rows), (0, k_pad - k_dim)))
    # PyTorch (Cout, Cin, kh, kw) -> (kh, kw, Cin, Cout) -> (K, Cout), matching im2col.
    w2d = jnp.transpose(w, (2, 3, 1, 0)).reshape(k_dim, cout)
    w2d = jnp.pad(w2d, ((0, k_pad - k_dim), (0, c_pad - cout))).astype(jnp.bfloat16)
    b_p = jnp.pad(b, (0, c_pad - cout)).reshape(1, c_pad)
    g_p = jnp.pad(gamma, (0, c_pad - cout))               # padded channels: gamma=0 -> out 0
    beta_p = jnp.pad(beta, (0, c_pad - cout))

    y, partial = conv_relu_stats(patches, w2d, b_p, tile_rows, p_rows)
    sums = jnp.sum(partial, axis=0)                       # (2, Cpad), tiny reduction
    mean = sums[0] / p_rows
    var = jnp.maximum(sums[1] / p_rows - mean * mean, 0.0)
    scale = g_p * jax.lax.rsqrt(var + EPS)
    shift = beta_p - mean * scale
    return y, scale, shift, (n, oh, ow, p_rows, cout, c_pad, tile_rows)


def conv_bn_block(x_nhwc, w, b, gamma, beta, k, s, pad, cout):
    y, scale, shift, (n, oh, ow, p_rows, cout, c_pad, tile_rows) = conv_relu_pass(
        x_nhwc, w, b, gamma, beta, k, s, pad, cout)
    out = bn_apply(y, scale.reshape(1, c_pad), shift.reshape(1, c_pad), tile_rows)
    return out[:p_rows, :cout].reshape(n, oh, ow, cout)   # NHWC for the next conv


def init_params(key):
    params = {}
    ks = jax.random.split(key, len(CONV_CFG) + 2)
    a = 0.1
    gain = (2.0 / (1.0 + a * a)) ** 0.5                   # kaiming_normal_(a=0.1), fan_in
    for idx, (cin, cout, k, s, p) in enumerate(CONV_CFG):
        fan_in = cin * k * k
        std = gain / (fan_in ** 0.5)
        params[f"conv{idx+1}_w"] = std * jax.random.normal(
            ks[idx], (cout, cin, k, k), jnp.float32)
        params[f"conv{idx+1}_b"] = jnp.zeros((cout,), jnp.float32)
        params[f"bn{idx+1}_gamma"] = jnp.ones((cout,), jnp.float32)
        params[f"bn{idx+1}_beta"] = jnp.zeros((cout,), jnp.float32)
    bound = 1.0 / (128.0 ** 0.5)                          # PyTorch Linear default init
    params["lin_w"] = jax.random.uniform(ks[-2], (2, 128), jnp.float32, -bound, bound)
    params["lin_b"] = jax.random.uniform(ks[-1], (2,), jnp.float32, -bound, bound)
    return params


@jax.jit
def audio_classifier_forward(params, x):
    # x: (N, 1, H, W) float32, NCHW (matches PyTorch). Convert once to NHWC.
    h = jnp.transpose(x, (0, 2, 3, 1))

    # Layers 1-3: conv + ReLU + BN (two tiled passes each).
    for idx in range(3):
        cin, cout, k, s, p = CONV_CFG[idx]
        h = conv_bn_block(
            h,
            params[f"conv{idx+1}_w"], params[f"conv{idx+1}_b"],
            params[f"bn{idx+1}_gamma"], params[f"bn{idx+1}_beta"],
            k, s, p, cout)

    # Layer 4: conv + ReLU + stats only; BN4 is folded into the fused head
    # (BN is per-channel affine, so pool(BN(y)) == pool(y)*scale + shift).
    cin, cout, k, s, p = CONV_CFG[3]
    y4, scale4, shift4, (n, oh, ow, p_rows, cout, c_pad, _) = conv_relu_pass(
        h, params["conv4_w"], params["conv4_b"],
        params["bn4_gamma"], params["bn4_beta"], k, s, p, cout)

    x_nsc = y4[:p_rows].reshape(n, oh * ow, c_pad)        # (N, S, Cpad), bf16, no transpose
    w_t = jnp.pad(params["lin_w"].T, ((0, c_pad - cout), (0, 0)))  # padded channels are 0
    logits = head(x_nsc, scale4.reshape(1, c_pad), shift4.reshape(1, c_pad),
                  w_t, params["lin_b"].reshape(1, 2))
    return logits


if __name__ == "__main__":
    key = jax.random.PRNGKey(0)
    pkey, xkey = jax.random.split(key)
    params = init_params(pkey)
    x = jax.random.normal(xkey, (2, 1, 16, 16), jnp.float32)   # (N, C=1, H, W)
    logits = audio_classifier_forward(params, x)
    jax.block_until_ready(logits)
    assert logits.shape == (2, 2) and logits.dtype == jnp.float32
    print("KERNEL_OK")
</pallas_src>

<mosaic_0001>
module attributes {stable_mosaic.version = 11 : i64} {
  func.func @bn_apply_kernel(%arg0: i32, %arg1: memref<128x128xbf16, #tpu.memory_space<vmem>>, %arg2: memref<1x128xf32, #tpu.memory_space<vmem>>, %arg3: memref<1x128xf32, #tpu.memory_space<vmem>>, %arg4: memref<128x128xbf16, #tpu.memory_space<vmem>>) attributes {dimension_semantics = [#tpu.dimension_semantics<parallel>], iteration_bounds = array<i64: 1>, scalar_prefetch = 0 : i64, scratch_operands = 0 : i64, tpu.core_type = #tpu.core_type<tc>, window_params = [{transform_indices = @transform_0, window_bounds = array<i64: 128, 128>}, {pipeline_mode = #tpu.pipeline_mode<synchronous>, transform_indices = @transform_1, window_bounds = array<i64: 1, 128>}, {pipeline_mode = #tpu.pipeline_mode<synchronous>, transform_indices = @transform_2, window_bounds = array<i64: 1, 128>}, {transform_indices = @transform_3, window_bounds = array<i64: 128, 128>}]} {
    %c0 = arith.constant 0 : index
    %c0_0 = arith.constant 0 : index
    %0 = vector.load %arg1[%c0, %c0_0] : memref<128x128xbf16, #tpu.memory_space<vmem>>, vector<128x128xbf16>
    %1 = arith.extf %0 : vector<128x128xbf16> to vector<128x128xf32>
    %c0_1 = arith.constant 0 : index
    %c0_2 = arith.constant 0 : index
    %2 = vector.load %arg2[%c0_1, %c0_2] : memref<1x128xf32, #tpu.memory_space<vmem>>, vector<1x128xf32>
    %3 = vector.broadcast %2 : vector<1x128xf32> to vector<128x128xf32>
    %4 = arith.mulf %1, %3 : vector<128x128xf32>
    %c0_3 = arith.constant 0 : index
    %c0_4 = arith.constant 0 : index
    %5 = vector.load %arg3[%c0_3, %c0_4] : memref<1x128xf32, #tpu.memory_space<vmem>>, vector<1x128xf32>
    %6 = vector.broadcast %5 : vector<1x128xf32> to vector<128x128xf32>
    %7 = arith.addf %4, %6 : vector<128x128xf32>
    %8 = arith.truncf %7 : vector<128x128xf32> to vector<128x128xbf16>
    %c0_5 = arith.constant 0 : index
    %c0_6 = arith.constant 0 : index
    %9 = vector.load %arg4[%c0_5, %c0_6] : memref<128x128xbf16, #tpu.memory_space<vmem>>, vector<128x128xbf16>
    tpu.vector_store %arg4[%c0_5, %c0_6], %8 {strides = array<i32>} : memref<128x128xbf16, #tpu.memory_space<vmem>>, vector<128x128xbf16>,
    return
  }
  func.func @transform_0(%arg0: i32) -> (i32, i32) {
    %c0_i32 = arith.constant 0 : i32
    %c0_i32_0 = arith.constant 0 : i32
    return %arg0, %c0_i32 : i32, i32
  }
  func.func @transform_1(%arg0: i32) -> (i32, i32) {
    %c0_i32 = arith.constant 0 : i32
    %c0_i32_0 = arith.constant 0 : i32
    %c0_i32_1 = arith.constant 0 : i32
    return %c0_i32, %c0_i32_0 : i32, i32
  }
  func.func @transform_2(%arg0: i32) -> (i32, i32) {
    %c0_i32 = arith.constant 0 : i32
    %c0_i32_0 = arith.constant 0 : i32
    %c0_i32_1 = arith.constant 0 : i32
    return %c0_i32, %c0_i32_0 : i32, i32
  }
  func.func @transform_3(%arg0: i32) -> (i32, i32) {
    %c0_i32 = arith.constant 0 : i32
    %c0_i32_0 = arith.constant 0 : i32
    return %arg0, %c0_i32 : i32, i32
  }
}

module attributes {stable_mosaic.version = 11 : i64} {
  func.func @conv_relu_stats_kernel(%arg0: i32, %arg1: memref<128x128xbf16, #tpu.memory_space<vmem>>, %arg2: memref<128x128xbf16, #tpu.memory_space<vmem>>, %arg3: memref<1x128xf32, #tpu.memory_space<vmem>>, %arg4: memref<128x128xbf16, #tpu.memory_space<vmem>>, %arg5: memref<1x2x128xf32, #tpu.memory_space<vmem>>) attributes {dimension_semantics = [#tpu.dimension_semantics<parallel>], iteration_bounds = array<i64: 1>, scalar_prefetch = 0 : i64, scratch_operands = 0 : i64, tpu.core_type = #tpu.core_type<tc>, window_params = [{transform_indices = @transform_0, window_bounds = array<i64: 128, 128>}, {pipeline_mode = #tpu.pipeline_mode<synchronous>, transform_indices = @transform_1, window_bounds = array<i64: 128, 128>}, {pipeline_mode = #tpu.pipeline_mode<synchronous>, transform_indices = @transform_2, window_bounds = array<i64: 1, 128>}, {transform_indices = @transform_3, window_bounds = array<i64: 128, 128>}, {transform_indices = @transform_4, window_bounds = array<i64: 1, 2, 128>}]} {
    %c0 = arith.constant 0 : index
    %c0_0 = arith.constant 0 : index
    %0 = vector.load %arg1[%c0, %c0_0] : memref<128x128xbf16, #tpu.memory_space<vmem>>, vector<128x128xbf16>
    %c0_1 = arith.constant 0 : index
    %c0_2 = arith.constant 0 : index
    %1 = vector.load %arg2[%c0_1, %c0_2] : memref<128x128xbf16, #tpu.memory_space<vmem>>, vector<128x128xbf16>
    %cst = arith.constant dense<0.000000e+00> : vector<128x128xf32>
    %2 = tpu.matmul %0, %1, %cst {dimension_numbers = #tpu.dot_dimension_numbers<[1], [0], [0], [1], [0, 0, 1, 1], [], []>} : vector<128x128xbf16>, vector<128x128xbf16>, vector<128x128xf32> -> vector<128x128xf32>
    %c0_3 = arith.constant 0 : index
    %c0_4 = arith.constant 0 : index
    %3 = vector.load %arg3[%c0_3, %c0_4] : memref<1x128xf32, #tpu.memory_space<vmem>>, vector<1x128xf32>
    %4 = vector.broadcast %3 : vector<1x128xf32> to vector<128x128xf32>
    %5 = arith.addf %2, %4 : vector<128x128xf32>
    %cst_5 = arith.constant 0.000000e+00 : f32
    %6 = vector.broadcast %cst_5 : f32 to vector<128x128xf32>
    %7 = arith.maximumf %5, %6 : vector<128x128xf32>
    %8 = arith.truncf %7 : vector<128x128xf32> to vector<128x128xbf16>
    %c0_6 = arith.constant 0 : index
    %c0_7 = arith.constant 0 : index
    %9 = vector.load %arg4[%c0_6, %c0_7] : memref<128x128xbf16, #tpu.memory_space<vmem>>, vector<128x128xbf16>
    tpu.vector_store %arg4[%c0_6, %c0_7], %8 {strides = array<i32>} : memref<128x128xbf16, #tpu.memory_space<vmem>>, vector<128x128xbf16>,
    %c128_i32 = arith.constant 128 : i32
    %10 = arith.muli %arg0, %c128_i32 : i32
    %11 = tpu.iota {dimensions = array<i32: 0>} : vector<128x128xi32>
    %12 = vector.broadcast %10 : i32 to vector<128x128xi32>
    %13 = arith.addi %12, %11 : vector<128x128xi32>
    %c128_i32_8 = arith.constant 128 : i32
    %14 = vector.broadcast %c128_i32_8 : i32 to vector<128x128xi32>
    %15 = arith.cmpi slt, %13, %14 : vector<128x128xi32>
    %cst_9 = arith.constant 0.000000e+00 : f32
    %16 = vector.broadcast %cst_9 : f32 to vector<128x128xf32>
    %17 = arith.select %15, %7, %16 : vector<128x128xi1>, vector<128x128xf32>
    %cst_10 = arith.constant dense<0.000000e+00> : vector<128xf32>
    %18 = vector.multi_reduction <add>, %17, %cst_10 [0] : vector<128x128xf32> to vector<128xf32>
    %19 = vector.shape_cast %18 : vector<128xf32> to vector<1x128xf32>
    %20 = arith.mulf %17, %17 : vector<128x128xf32>
    %cst_11 = arith.constant dense<0.000000e+00> : vector<128xf32>
    %21 = vector.multi_reduction <add>, %20, %cst_11 [0] : vector<128x128xf32> to vector<128xf32>
    %22 = vector.shape_cast %21 : vector<128xf32> to vector<1x128xf32>
    %23 = tpu.concatenate %19, %22 in 0 : vector<1x128xf32>, vector<1x128xf32> -> vector<2x128xf32>
    %24 = vector.shape_cast %23 : vector<2x128xf32> to vector<1x2x128xf32>
    %c0_12 = arith.constant 0 : index
    %c0_13 = arith.constant 0 : index
    %c0_14 = arith.constant 0 : index
    %25 = vector.load %arg5[%c0_12, %c0_13, %c0_14] : memref<1x2x128xf32, #tpu.memory_space<vmem>>, vector<1x2x128xf32>
    tpu.vector_store %arg5[%c0_12, %c0_13, %c0_14], %24 {strides = array<i32>} : memref<1x2x128xf32, #tpu.memory_space<vmem>>, vector<1x2x128xf32>,
    return
  }
  func.func @transform_0(%arg0: i32) -> (i32, i32) {
    %c0_i32 = arith.constant 0 : i32
    %c0_i32_0 = arith.constant 0 : i32
    return %arg0, %c0_i32 : i32, i32
  }
  func.func @transform_1(%arg0: i32) -> (i32, i32) {
    %c0_i32 = arith.constant 0 : i32
    %c0_i32_0 = arith.constant 0 : i32
    %c0_i32_1 = arith.constant 0 : i32
    return %c0_i32, %c0_i32_0 : i32, i32
  }
  func.func @transform_2(%arg0: i32) -> (i32, i32) {
    %c0_i32 = arith.constant 0 : i32
    %c0_i32_0 = arith.constant 0 : i32
    %c0_i32_1 = arith.constant 0 : i32
    return %c0_i32, %c0_i32_0 : i32, i32
  }
  func.func @transform_3(%arg0: i32) -> (i32, i32) {
    %c0_i32 = arith.constant 0 : i32
    %c0_i32_0 = arith.constant 0 : i32
    return %arg0, %c0_i32 : i32, i32
  }
  func.func @transform_4(%arg0: i32) -> (i32, i32, i32) {
    %c0_i32 = arith.constant 0 : i32
    %c0_i32_0 = arith.constant 0 : i32
    %c0_i32_1 = arith.constant 0 : i32
    return %arg0, %c0_i32, %c0_i32_0 : i32, i32, i32
  }
}

module attributes {stable_mosaic.version = 11 : i64} {
  func.func @conv_relu_stats_kernel(%arg0: i32, %arg1: memref<32x256xbf16, #tpu.memory_space<vmem>>, %arg2: memref<256x128xbf16, #tpu.memory_space<vmem>>, %arg3: memref<1x128xf32, #tpu.memory_space<vmem>>, %arg4: memref<32x128xbf16, #tpu.memory_space<vmem>>, %arg5: memref<1x2x128xf32, #tpu.memory_space<vmem>>) attributes {dimension_semantics = [#tpu.dimension_semantics<parallel>], iteration_bounds = array<i64: 1>, scalar_prefetch = 0 : i64, scratch_operands = 0 : i64, tpu.core_type = #tpu.core_type<tc>, window_params = [{transform_indices = @transform_0, window_bounds = array<i64: 32, 256>}, {pipeline_mode = #tpu.pipeline_mode<synchronous>, transform_indices = @transform_1, window_bounds = array<i64: 256, 128>}, {pipeline_mode = #tpu.pipeline_mode<synchronous>, transform_indices = @transform_2, window_bounds = array<i64: 1, 128>}, {transform_indices = @transform_3, window_bounds = array<i64: 32, 128>}, {transform_indices = @transform_4, window_bounds = array<i64: 1, 2, 128>}]} {
    %c0 = arith.constant 0 : index
    %c0_0 = arith.constant 0 : index
    %0 = vector.load %arg1[%c0, %c0_0] : memref<32x256xbf16, #tpu.memory_space<vmem>>, vector<32x256xbf16>
    %c0_1 = arith.constant 0 : index
    %c0_2 = arith.constant 0 : index
    %1 = vector.load %arg2[%c0_1, %c0_2] : memref<256x128xbf16, #tpu.memory_space<vmem>>, vector<256x128xbf16>
    %cst = arith.constant dense<0.000000e+00> : vector<32x128xf32>
    %2 = tpu.matmul %0, %1, %cst {dimension_numbers = #tpu.dot_dimension_numbers<[1], [0], [0], [1], [0, 0, 1, 1], [], []>} : vector<32x256xbf16>, vector<256x128xbf16>, vector<32x128xf32> -> vector<32x128xf32>
    %c0_3 = arith.constant 0 : index
    %c0_4 = arith.constant 0 : index
    %3 = vector.load %arg3[%c0_3, %c0_4] : memref<1x128xf32, #tpu.memory_space<vmem>>, vector<1x128xf32>
    %4 = vector.broadcast %3 : vector<1x128xf32> to vector<32x128xf32>
    %5 = arith.addf %2, %4 : vector<32x128xf32>
    %cst_5 = arith.constant 0.000000e+00 : f32
    %6 = vector.broadcast %cst_5 : f32 to vector<32x128xf32>
    %7 = arith.maximumf %5, %6 : vector<32x128xf32>
    %8 = arith.truncf %7 : vector<32x128xf32> to vector<32x128xbf16>
    %c0_6 = arith.constant 0 : index
    %c0_7 = arith.constant 0 : index
    %9 = vector.load %arg4[%c0_6, %c0_7] : memref<32x128xbf16, #tpu.memory_space<vmem>>, vector<32x128xbf16>
    tpu.vector_store %arg4[%c0_6, %c0_7], %8 {strides = array<i32>} : memref<32x128xbf16, #tpu.memory_space<vmem>>, vector<32x128xbf16>,
    %c32_i32 = arith.constant 32 : i32
    %10 = arith.muli %arg0, %c32_i32 : i32
    %11 = tpu.iota {dimensions = array<i32: 0>} : vector<32x128xi32>
    %12 = vector.broadcast %10 : i32 to vector<32x128xi32>
    %13 = arith.addi %12, %11 : vector<32x128xi32>
    %c32_i32_8 = arith.constant 32 : i32
    %14 = vector.broadcast %c32_i32_8 : i32 to vector<32x128xi32>
    %15 = arith.cmpi slt, %13, %14 : vector<32x128xi32>
    %cst_9 = arith.constant 0.000000e+00 : f32
    %16 = vector.broadcast %cst_9 : f32 to vector<32x128xf32>
    %17 = arith.select %15, %7, %16 : vector<32x128xi1>, vector<32x128xf32>
    %cst_10 = arith.constant dense<0.000000e+00> : vector<128xf32>
    %18 = vector.multi_reduction <add>, %17, %cst_10 [0] : vector<32x128xf32> to vector<128xf32>
    %19 = vector.shape_cast %18 : vector<128xf32> to vector<1x128xf32>
    %20 = arith.mulf %17, %17 : vector<32x128xf32>
    %cst_11 = arith.constant dense<0.000000e+00> : vector<128xf32>
    %21 = vector.multi_reduction <add>, %20, %cst_11 [0] : vector<32x128xf32> to vector<128xf32>
    %22 = vector.shape_cast %21 : vector<128xf32> to vector<1x128xf32>
    %23 = tpu.concatenate %19, %22 in 0 : vector<1x128xf32>, vector<1x128xf32> -> vector<2x128xf32>
    %24 = vector.shape_cast %23 : vector<2x128xf32> to vector<1x2x128xf32>
    %c0_12 = arith.constant 0 : index
    %c0_13 = arith.constant 0 : index
    %c0_14 = arith.constant 0 : index
    %25 = vector.load %arg5[%c0_12, %c0_13, %c0_14] : memref<1x2x128xf32, #tpu.memory_space<vmem>>, vector<1x2x128xf32>
    tpu.vector_store %arg5[%c0_12, %c0_13, %c0_14], %24 {strides = array<i32>} : memref<1x2x128xf32, #tpu.memory_space<vmem>>, vector<1x2x128xf32>,
    return
  }
  func.func @transform_0(%arg0: i32) -> (i32, i32) {
    %c0_i32 = arith.constant 0 : i32
    %c0_i32_0 = arith.constant 0 : i32
    return %arg0, %c0_i32 : i32, i32
  }
  func.func @transform_1(%arg0: i32) -> (i32, i32) {
    %c0_i32 = arith.constant 0 : i32
    %c0_i32_0 = arith.constant 0 : i32
    %c0_i32_1 = arith.constant 0 : i32
    return %c0_i32, %c0_i32_0 : i32, i32
  }
  func.func @transform_2(%arg0: i32) -> (i32, i32) {
    %c0_i32 = arith.constant 0 : i32
    %c0_i32_0 = arith.constant 0 : i32
    %c0_i32_1 = arith.constant 0 : i32
    return %c0_i32, %c0_i32_0 : i32, i32
  }
  func.func @transform_3(%arg0: i32) -> (i32, i32) {
    %c0_i32 = arith.constant 0 : i32
    %c0_i32_0 = arith.constant 0 : i32
    return %arg0, %c0_i32 : i32, i32
  }
  func.func @transform_4(%arg0: i32) -> (i32, i32, i32) {
    %c0_i32 = arith.constant 0 : i32
    %c0_i32_0 = arith.constant 0 : i32
    %c0_i32_1 = arith.constant 0 : i32
    return %arg0, %c0_i32, %c0_i32_0 : i32, i32, i32
  }
}

module attributes {stable_mosaic.version = 11 : i64} {
  func.func @bn_apply_kernel(%arg0: i32, %arg1: memref<32x128xbf16, #tpu.memory_space<vmem>>, %arg2: memref<1x128xf32, #tpu.memory_space<vmem>>, %arg3: memref<1x128xf32, #tpu.memory_space<vmem>>, %arg4: memref<32x128xbf16, #tpu.memory_space<vmem>>) attributes {dimension_semantics = [#tpu.dimension_semantics<parallel>], iteration_bounds = array<i64: 1>, scalar_prefetch = 0 : i64, scratch_operands = 0 : i64, tpu.core_type = #tpu.core_type<tc>, window_params = [{transform_indices = @transform_0, window_bounds = array<i64: 32, 128>}, {pipeline_mode = #tpu.pipeline_mode<synchronous>, transform_indices = @transform_1, window_bounds = array<i64: 1, 128>}, {pipeline_mode = #tpu.pipeline_mode<synchronous>, transform_indices = @transform_2, window_bounds = array<i64: 1, 128>}, {transform_indices = @transform_3, window_bounds = array<i64: 32, 128>}]} {
    %c0 = arith.constant 0 : index
    %c0_0 = arith.constant 0 : index
    %0 = vector.load %arg1[%c0, %c0_0] : memref<32x128xbf16, #tpu.memory_space<vmem>>, vector<32x128xbf16>
    %1 = arith.extf %0 : vector<32x128xbf16> to vector<32x128xf32>
    %c0_1 = arith.constant 0 : index
    %c0_2 = arith.constant 0 : index
    %2 = vector.load %arg2[%c0_1, %c0_2] : memref<1x128xf32, #tpu.memory_space<vmem>>, vector<1x128xf32>
    %3 = vector.broadcast %2 : vector<1x128xf32> to vector<32x128xf32>
    %4 = arith.mulf %1, %3 : vector<32x128xf32>
    %c0_3 = arith.constant 0 : index
    %c0_4 = arith.constant 0 : index
    %5 = vector.load %arg3[%c0_3, %c0_4] : memref<1x128xf32, #tpu.memory_space<vmem>>, vector<1x128xf32>
    %6 = vector.broadcast %5 : vector<1x128xf32> to vector<32x128xf32>
    %7 = arith.addf %4, %6 : vector<32x128xf32>
    %8 = arith.truncf %7 : vector<32x128xf32> to vector<32x128xbf16>
    %c0_5 = arith.constant 0 : index
    %c0_6 = arith.constant 0 : index
    %9 = vector.load %arg4[%c0_5, %c0_6] : memref<32x128xbf16, #tpu.memory_space<vmem>>, vector<32x128xbf16>
    tpu.vector_store %arg4[%c0_5, %c0_6], %8 {strides = array<i32>} : memref<32x128xbf16, #tpu.memory_space<vmem>>, vector<32x128xbf16>,
    return
  }
  func.func @transform_0(%arg0: i32) -> (i32, i32) {
    %c0_i32 = arith.constant 0 : i32
    %c0_i32_0 = arith.constant 0 : i32
    return %arg0, %c0_i32 : i32, i32
  }
  func.func @transform_1(%arg0: i32) -> (i32, i32) {
    %c0_i32 = arith.constant 0 : i32
    %c0_i32_0 = arith.constant 0 : i32
    %c0_i32_1 = arith.constant 0 : i32
    return %c0_i32, %c0_i32_0 : i32, i32
  }
  func.func @transform_2(%arg0: i32) -> (i32, i32) {
    %c0_i32 = arith.constant 0 : i32
    %c0_i32_0 = arith.constant 0 : i32
    %c0_i32_1 = arith.constant 0 : i32
    return %c0_i32, %c0_i32_0 : i32, i32
  }
  func.func @transform_3(%arg0: i32) -> (i32, i32) {
    %c0_i32 = arith.constant 0 : i32
    %c0_i32_0 = arith.constant 0 : i32
    return %arg0, %c0_i32 : i32, i32
  }
}

module attributes {stable_mosaic.version = 11 : i64} {
  func.func @conv_relu_stats_kernel(%arg0: i32, %arg1: memref<16x384xbf16, #tpu.memory_space<vmem>>, %arg2: memref<384x128xbf16, #tpu.memory_space<vmem>>, %arg3: memref<1x128xf32, #tpu.memory_space<vmem>>, %arg4: memref<16x128xbf16, #tpu.memory_space<vmem>>, %arg5: memref<1x2x128xf32, #tpu.memory_space<vmem>>) attributes {dimension_semantics = [#tpu.dimension_semantics<parallel>], iteration_bounds = array<i64: 1>, scalar_prefetch = 0 : i64, scratch_operands = 0 : i64, tpu.core_type = #tpu.core_type<tc>, window_params = [{transform_indices = @transform_0, window_bounds = array<i64: 16, 384>}, {pipeline_mode = #tpu.pipeline_mode<synchronous>, transform_indices = @transform_1, window_bounds = array<i64: 384, 128>}, {pipeline_mode = #tpu.pipeline_mode<synchronous>, transform_indices = @transform_2, window_bounds = array<i64: 1, 128>}, {transform_indices = @transform_3, window_bounds = array<i64: 16, 128>}, {transform_indices = @transform_4, window_bounds = array<i64: 1, 2, 128>}]} {
    %c0 = arith.constant 0 : index
    %c0_0 = arith.constant 0 : index
    %0 = vector.load %arg1[%c0, %c0_0] : memref<16x384xbf16, #tpu.memory_space<vmem>>, vector<16x384xbf16>
    %c0_1 = arith.constant 0 : index
    %c0_2 = arith.constant 0 : index
    %1 = vector.load %arg2[%c0_1, %c0_2] : memref<384x128xbf16, #tpu.memory_space<vmem>>, vector<384x128xbf16>
    %cst = arith.constant dense<0.000000e+00> : vector<16x128xf32>
    %2 = tpu.matmul %0, %1, %cst {dimension_numbers = #tpu.dot_dimension_numbers<[1], [0], [0], [1], [0, 0, 1, 1], [], []>} : vector<16x384xbf16>, vector<384x128xbf16>, vector<16x128xf32> -> vector<16x128xf32>
    %c0_3 = arith.constant 0 : index
    %c0_4 = arith.constant 0 : index
    %3 = vector.load %arg3[%c0_3, %c0_4] : memref<1x128xf32, #tpu.memory_space<vmem>>, vector<1x128xf32>
    %4 = vector.broadcast %3 : vector<1x128xf32> to vector<16x128xf32>
    %5 = arith.addf %2, %4 : vector<16x128xf32>
    %cst_5 = arith.constant 0.000000e+00 : f32
    %6 = vector.broadcast %cst_5 : f32 to vector<16x128xf32>
    %7 = arith.maximumf %5, %6 : vector<16x128xf32>
    %8 = arith.truncf %7 : vector<16x128xf32> to vector<16x128xbf16>
    %c0_6 = arith.constant 0 : index
    %c0_7 = arith.constant 0 : index
    %9 = vector.load %arg4[%c0_6, %c0_7] : memref<16x128xbf16, #tpu.memory_space<vmem>>, vector<16x128xbf16>
    tpu.vector_store %arg4[%c0_6, %c0_7], %8 {strides = array<i32>} : memref<16x128xbf16, #tpu.memory_space<vmem>>, vector<16x128xbf16>,
    %c16_i32 = arith.constant 16 : i32
    %10 = arith.muli %arg0, %c16_i32 : i32
    %11 = tpu.iota {dimensions = array<i32: 0>} : vector<16x128xi32>
    %12 = vector.broadcast %10 : i32 to vector<16x128xi32>
    %13 = arith.addi %12, %11 : vector<16x128xi32>
    %c8_i32 = arith.constant 8 : i32
    %14 = vector.broadcast %c8_i32 : i32 to vector<16x128xi32>
    %15 = arith.cmpi slt, %13, %14 : vector<16x128xi32>
    %cst_8 = arith.constant 0.000000e+00 : f32
    %16 = vector.broadcast %cst_8 : f32 to vector<16x128xf32>
    %17 = arith.select %15, %7, %16 : vector<16x128xi1>, vector<16x128xf32>
    %cst_9 = arith.constant dense<0.000000e+00> : vector<128xf32>
    %18 = vector.multi_reduction <add>, %17, %cst_9 [0] : vector<16x128xf32> to vector<128xf32>
    %19 = vector.shape_cast %18 : vector<128xf32> to vector<1x128xf32>
    %20 = arith.mulf %17, %17 : vector<16x128xf32>
    %cst_10 = arith.constant dense<0.000000e+00> : vector<128xf32>
    %21 = vector.multi_reduction <add>, %20, %cst_10 [0] : vector<16x128xf32> to vector<128xf32>
    %22 = vector.shape_cast %21 : vector<128xf32> to vector<1x128xf32>
    %23 = tpu.concatenate %19, %22 in 0 : vector<1x128xf32>, vector<1x128xf32> -> vector<2x128xf32>
    %24 = vector.shape_cast %23 : vector<2x128xf32> to vector<1x2x128xf32>
    %c0_11 = arith.constant 0 : index
    %c0_12 = arith.constant 0 : index
    %c0_13 = arith.constant 0 : index
    %25 = vector.load %arg5[%c0_11, %c0_12, %c0_13] : memref<1x2x128xf32, #tpu.memory_space<vmem>>, vector<1x2x128xf32>
    tpu.vector_store %arg5[%c0_11, %c0_12, %c0_13], %24 {strides = array<i32>} : memref<1x2x128xf32, #tpu.memory_space<vmem>>, vector<1x2x128xf32>,
    return
  }
  func.func @transform_0(%arg0: i32) -> (i32, i32) {
    %c0_i32 = arith.constant 0 : i32
    %c0_i32_0 = arith.constant 0 : i32
    return %arg0, %c0_i32 : i32, i32
  }
  func.func @transform_1(%arg0: i32) -> (i32, i32) {
    %c0_i32 = arith.constant 0 : i32
    %c0_i32_0 = arith.constant 0 : i32
    %c0_i32_1 = arith.constant 0 : i32
    return %c0_i32, %c0_i32_0 : i32, i32
  }
  func.func @transform_2(%arg0: i32) -> (i32, i32) {
    %c0_i32 = arith.constant 0 : i32
    %c0_i32_0 = arith.constant 0 : i32
    %c0_i32_1 = arith.constant 0 : i32
    return %c0_i32, %c0_i32_0 : i32, i32
  }
  func.func @transform_3(%arg0: i32) -> (i32, i32) {
    %c0_i32 = arith.constant 0 : i32
    %c0_i32_0 = arith.constant 0 : i32
    return %arg0, %c0_i32 : i32, i32
  }
  func.func @transform_4(%arg0: i32) -> (i32, i32, i32) {
    %c0_i32 = arith.constant 0 : i32
    %c0_i32_0 = arith.constant 0 : i32
    %c0_i32_1 = arith.constant 0 : i32
    return %arg0, %c0_i32, %c0_i32_0 : i32, i32, i32
  }
}

module attributes {stable_mosaic.version = 11 : i64} {
  func.func @bn_apply_kernel(%arg0: i32, %arg1: memref<16x128xbf16, #tpu.memory_space<vmem>>, %arg2: memref<1x128xf32, #tpu.memory_space<vmem>>, %arg3: memref<1x128xf32, #tpu.memory_space<vmem>>, %arg4: memref<16x128xbf16, #tpu.memory_space<vmem>>) attributes {dimension_semantics = [#tpu.dimension_semantics<parallel>], iteration_bounds = array<i64: 1>, scalar_prefetch = 0 : i64, scratch_operands = 0 : i64, tpu.core_type = #tpu.core_type<tc>, window_params = [{transform_indices = @transform_0, window_bounds = array<i64: 16, 128>}, {pipeline_mode = #tpu.pipeline_mode<synchronous>, transform_indices = @transform_1, window_bounds = array<i64: 1, 128>}, {pipeline_mode = #tpu.pipeline_mode<synchronous>, transform_indices = @transform_2, window_bounds = array<i64: 1, 128>}, {transform_indices = @transform_3, window_bounds = array<i64: 16, 128>}]} {
    %c0 = arith.constant 0 : index
    %c0_0 = arith.constant 0 : index
    %0 = vector.load %arg1[%c0, %c0_0] : memref<16x128xbf16, #tpu.memory_space<vmem>>, vector<16x128xbf16>
    %1 = arith.extf %0 : vector<16x128xbf16> to vector<16x128xf32>
    %c0_1 = arith.constant 0 : index
    %c0_2 = arith.constant 0 : index
    %2 = vector.load %arg2[%c0_1, %c0_2] : memref<1x128xf32, #tpu.memory_space<vmem>>, vector<1x128xf32>
    %3 = vector.broadcast %2 : vector<1x128xf32> to vector<16x128xf32>
    %4 = arith.mulf %1, %3 : vector<16x128xf32>
    %c0_3 = arith.constant 0 : index
    %c0_4 = arith.constant 0 : index
    %5 = vector.load %arg3[%c0_3, %c0_4] : memref<1x128xf32, #tpu.memory_space<vmem>>, vector<1x128xf32>
    %6 = vector.broadcast %5 : vector<1x128xf32> to vector<16x128xf32>
    %7 = arith.addf %4, %6 : vector<16x128xf32>
    %8 = arith.truncf %7 : vector<16x128xf32> to vector<16x128xbf16>
    %c0_5 = arith.constant 0 : index
    %c0_6 = arith.constant 0 : index
    %9 = vector.load %arg4[%c0_5, %c0_6] : memref<16x128xbf16, #tpu.memory_space<vmem>>, vector<16x128xbf16>
    tpu.vector_store %arg4[%c0_5, %c0_6], %8 {strides = array<i32>} : memref<16x128xbf16, #tpu.memory_space<vmem>>, vector<16x128xbf16>,
    return
  }
  func.func @transform_0(%arg0: i32) -> (i32, i32) {
    %c0_i32 = arith.constant 0 : i32
    %c0_i32_0 = arith.constant 0 : i32
    return %arg0, %c0_i32 : i32, i32
  }
  func.func @transform_1(%arg0: i32) -> (i32, i32) {
    %c0_i32 = arith.constant 0 : i32
    %c0_i32_0 = arith.constant 0 : i32
    %c0_i32_1 = arith.constant 0 : i32
    return %c0_i32, %c0_i32_0 : i32, i32
  }
  func.func @transform_2(%arg0: i32) -> (i32, i32) {
    %c0_i32 = arith.constant 0 : i32
    %c0_i32_0 = arith.constant 0 : i32
    %c0_i32_1 = arith.constant 0 : i32
    return %c0_i32, %c0_i32_0 : i32, i32
  }
  func.func @transform_3(%arg0: i32) -> (i32, i32) {
    %c0_i32 = arith.constant 0 : i32
    %c0_i32_0 = arith.constant 0 : i32
    return %arg0, %c0_i32 : i32, i32
  }
}

module attributes {stable_mosaic.version = 11 : i64} {
  func.func @conv_relu_stats_kernel(%arg0: i32, %arg1: memref<16x640xbf16, #tpu.memory_space<vmem>>, %arg2: memref<640x128xbf16, #tpu.memory_space<vmem>>, %arg3: memref<1x128xf32, #tpu.memory_space<vmem>>, %arg4: memref<16x128xbf16, #tpu.memory_space<vmem>>, %arg5: memref<1x2x128xf32, #tpu.memory_space<vmem>>) attributes {dimension_semantics = [#tpu.dimension_semantics<parallel>], iteration_bounds = array<i64: 1>, scalar_prefetch = 0 : i64, scratch_operands = 0 : i64, tpu.core_type = #tpu.core_type<tc>, window_params = [{transform_indices = @transform_0, window_bounds = array<i64: 16, 640>}, {pipeline_mode = #tpu.pipeline_mode<synchronous>, transform_indices = @transform_1, window_bounds = array<i64: 640, 128>}, {pipeline_mode = #tpu.pipeline_mode<synchronous>, transform_indices = @transform_2, window_bounds = array<i64: 1, 128>}, {transform_indices = @transform_3, window_bounds = array<i64: 16, 128>}, {transform_indices = @transform_4, window_bounds = array<i64: 1, 2, 128>}]} {
    %c0 = arith.constant 0 : index
    %c0_0 = arith.constant 0 : index
    %0 = vector.load %arg1[%c0, %c0_0] : memref<16x640xbf16, #tpu.memory_space<vmem>>, vector<16x640xbf16>
    %c0_1 = arith.constant 0 : index
    %c0_2 = arith.constant 0 : index
    %1 = vector.load %arg2[%c0_1, %c0_2] : memref<640x128xbf16, #tpu.memory_space<vmem>>, vector<640x128xbf16>
    %cst = arith.constant dense<0.000000e+00> : vector<16x128xf32>
    %2 = tpu.matmul %0, %1, %cst {dimension_numbers = #tpu.dot_dimension_numbers<[1], [0], [0], [1], [0, 0, 1, 1], [], []>} : vector<16x640xbf16>, vector<640x128xbf16>, vector<16x128xf32> -> vector<16x128xf32>
    %c0_3 = arith.constant 0 : index
    %c0_4 = arith.constant 0 : index
    %3 = vector.load %arg3[%c0_3, %c0_4] : memref<1x128xf32, #tpu.memory_space<vmem>>, vector<1x128xf32>
    %4 = vector.broadcast %3 : vector<1x128xf32> to vector<16x128xf32>
    %5 = arith.addf %2, %4 : vector<16x128xf32>
    %cst_5 = arith.constant 0.000000e+00 : f32
    %6 = vector.broadcast %cst_5 : f32 to vector<16x128xf32>
    %7 = arith.maximumf %5, %6 : vector<16x128xf32>
    %8 = arith.truncf %7 : vector<16x128xf32> to vector<16x128xbf16>
    %c0_6 = arith.constant 0 : index
    %c0_7 = arith.constant 0 : index
    %9 = vector.load %arg4[%c0_6, %c0_7] : memref<16x128xbf16, #tpu.memory_space<vmem>>, vector<16x128xbf16>
    tpu.vector_store %arg4[%c0_6, %c0_7], %8 {strides = array<i32>} : memref<16x128xbf16, #tpu.memory_space<vmem>>, vector<16x128xbf16>,
    %c16_i32 = arith.constant 16 : i32
    %10 = arith.muli %arg0, %c16_i32 : i32
    %11 = tpu.iota {dimensions = array<i32: 0>} : vector<16x128xi32>
    %12 = vector.broadcast %10 : i32 to vector<16x128xi32>
    %13 = arith.addi %12, %11 : vector<16x128xi32>
    %c2_i32 = arith.constant 2 : i32
    %14 = vector.broadcast %c2_i32 : i32 to vector<16x128xi32>
    %15 = arith.cmpi slt, %13, %14 : vector<16x128xi32>
    %cst_8 = arith.constant 0.000000e+00 : f32
    %16 = vector.broadcast %cst_8 : f32 to vector<16x128xf32>
    %17 = arith.select %15, %7, %16 : vector<16x128xi1>, vector<16x128xf32>
    %cst_9 = arith.constant dense<0.000000e+00> : vector<128xf32>
    %18 = vector.multi_reduction <add>, %17, %cst_9 [0] : vector<16x128xf32> to vector<128xf32>
    %19 = vector.shape_cast %18 : vector<128xf32> to vector<1x128xf32>
    %20 = arith.mulf %17, %17 : vector<16x128xf32>
    %cst_10 = arith.constant dense<0.000000e+00> : vector<128xf32>
    %21 = vector.multi_reduction <add>, %20, %cst_10 [0] : vector<16x128xf32> to vector<128xf32>
    %22 = vector.shape_cast %21 : vector<128xf32> to vector<1x128xf32>
    %23 = tpu.concatenate %19, %22 in 0 : vector<1x128xf32>, vector<1x128xf32> -> vector<2x128xf32>
    %24 = vector.shape_cast %23 : vector<2x128xf32> to vector<1x2x128xf32>
    %c0_11 = arith.constant 0 : index
    %c0_12 = arith.constant 0 : index
    %c0_13 = arith.constant 0 : index
    %25 = vector.load %arg5[%c0_11, %c0_12, %c0_13] : memref<1x2x128xf32, #tpu.memory_space<vmem>>, vector<1x2x128xf32>
    tpu.vector_store %arg5[%c0_11, %c0_12, %c0_13], %24 {strides = array<i32>} : memref<1x2x128xf32, #tpu.memory_space<vmem>>, vector<1x2x128xf32>,
    return
  }
  func.func @transform_0(%arg0: i32) -> (i32, i32) {
    %c0_i32 = arith.constant 0 : i32
    %c0_i32_0 = arith.constant 0 : i32
    return %arg0, %c0_i32 : i32, i32
  }
  func.func @transform_1(%arg0: i32) -> (i32, i32) {
    %c0_i32 = arith.constant 0 : i32
    %c0_i32_0 = arith.constant 0 : i32
    %c0_i32_1 = arith.constant 0 : i32
    return %c0_i32, %c0_i32_0 : i32, i32
  }
  func.func @transform_2(%arg0: i32) -> (i32, i32) {
    %c0_i32 = arith.constant 0 : i32
    %c0_i32_0 = arith.constant 0 : i32
    %c0_i32_1 = arith.constant 0 : i32
    return %c0_i32, %c0_i32_0 : i32, i32
  }
  func.func @transform_3(%arg0: i32) -> (i32, i32) {
    %c0_i32 = arith.constant 0 : i32
    %c0_i32_0 = arith.constant 0 : i32
    return %arg0, %c0_i32 : i32, i32
  }
  func.func @transform_4(%arg0: i32) -> (i32, i32, i32) {
    %c0_i32 = arith.constant 0 : i32
    %c0_i32_0 = arith.constant 0 : i32
    %c0_i32_1 = arith.constant 0 : i32
    return %arg0, %c0_i32, %c0_i32_0 : i32, i32, i32
  }
}

module attributes {stable_mosaic.version = 11 : i64} {
  func.func @head_kernel(%arg0: i32, %arg1: memref<2x1x128xbf16, #tpu.memory_space<vmem>>, %arg2: memref<1x128xf32, #tpu.memory_space<vmem>>, %arg3: memref<1x128xf32, #tpu.memory_space<vmem>>, %arg4: memref<128x2xf32, #tpu.memory_space<vmem>>, %arg5: memref<1x2xf32, #tpu.memory_space<vmem>>, %arg6: memref<2x2xf32, #tpu.memory_space<vmem>>) attributes {dimension_semantics = [#tpu.dimension_semantics<arbitrary>], iteration_bounds = array<i64: 1>, scalar_prefetch = 0 : i64, scratch_operands = 0 : i64, tpu.core_type = #tpu.core_type<tc>, window_params = [{pipeline_mode = #tpu.pipeline_mode<synchronous>, transform_indices = @transform_0, window_bounds = array<i64: 2, 1, 128>}, {pipeline_mode = #tpu.pipeline_mode<synchronous>, transform_indices = @transform_1, window_bounds = array<i64: 1, 128>}, {pipeline_mode = #tpu.pipeline_mode<synchronous>, transform_indices = @transform_2, window_bounds = array<i64: 1, 128>}, {pipeline_mode = #tpu.pipeline_mode<synchronous>, transform_indices = @transform_3, window_bounds = array<i64: 128, 2>}, {pipeline_mode = #tpu.pipeline_mode<synchronous>, transform_indices = @transform_4, window_bounds = array<i64: 1, 2>}, {pipeline_mode = #tpu.pipeline_mode<synchronous>, transform_indices = @transform_5, window_bounds = array<i64: 2, 2>}]} {
    %c0 = arith.constant 0 : index
    %c0_0 = arith.constant 0 : index
    %c0_1 = arith.constant 0 : index
    %0 = vector.load %arg1[%c0, %c0_0, %c0_1] : memref<2x1x128xbf16, #tpu.memory_space<vmem>>, vector<2x1x128xbf16>
    %1 = arith.extf %0 : vector<2x1x128xbf16> to vector<2x1x128xf32>
    %cst = arith.constant dense<0.000000e+00> : vector<2x128xf32>
    %2 = vector.multi_reduction <add>, %1, %cst [1] : vector<2x1x128xf32> to vector<2x128xf32>
    %cst_2 = arith.constant 1.000000e+00 : f32
    %3 = vector.broadcast %cst_2 : f32 to vector<2x128xf32>
    %4 = arith.divf %2, %3 : vector<2x128xf32>
    %c0_3 = arith.constant 0 : index
    %c0_4 = arith.constant 0 : index
    %5 = vector.load %arg2[%c0_3, %c0_4] : memref<1x128xf32, #tpu.memory_space<vmem>>, vector<1x128xf32>
    %6 = vector.broadcast %5 : vector<1x128xf32> to vector<2x128xf32>
    %7 = arith.mulf %4, %6 : vector<2x128xf32>
    %c0_5 = arith.constant 0 : index
    %c0_6 = arith.constant 0 : index
    %8 = vector.load %arg3[%c0_5, %c0_6] : memref<1x128xf32, #tpu.memory_space<vmem>>, vector<1x128xf32>
    %9 = vector.broadcast %8 : vector<1x128xf32> to vector<2x128xf32>
    %10 = arith.addf %7, %9 : vector<2x128xf32>
    %c0_7 = arith.constant 0 : index
    %c0_8 = arith.constant 0 : index
    %11 = vector.load %arg4[%c0_7, %c0_8] : memref<128x2xf32, #tpu.memory_space<vmem>>, vector<128x2xf32>
    %cst_9 = arith.constant dense<0.000000e+00> : vector<2x2xf32>
    %12 = tpu.matmul %10, %11, %cst_9 {dimension_numbers = #tpu.dot_dimension_numbers<[1], [0], [0], [1], [0, 0, 1, 1], [], []>} : vector<2x128xf32>, vector<128x2xf32>, vector<2x2xf32> -> vector<2x2xf32>
    %c0_10 = arith.constant 0 : index
    %c0_11 = arith.constant 0 : index
    %13 = vector.load %arg5[%c0_10, %c0_11] : memref<1x2xf32, #tpu.memory_space<vmem>>, vector<1x2xf32>
    %14 = vector.broadcast %13 : vector<1x2xf32> to vector<2x2xf32>
    %15 = arith.addf %12, %14 : vector<2x2xf32>
    %c0_12 = arith.constant 0 : index
    %c0_13 = arith.constant 0 : index
    %16 = vector.load %arg6[%c0_12, %c0_13] : memref<2x2xf32, #tpu.memory_space<vmem>>, vector<2x2xf32>
    tpu.vector_store %arg6[%c0_12, %c0_13], %15 {strides = array<i32>} : memref<2x2xf32, #tpu.memory_space<vmem>>, vector<2x2xf32>,
    return
  }
  func.func @transform_0(%arg0: i32) -> (i32, i32, i32) {
    %c0_i32 = arith.constant 0 : i32
    %c0_i32_0 = arith.constant 0 : i32
    %c0_i32_1 = arith.constant 0 : i32
    %c0_i32_2 = arith.constant 0 : i32
    return %c0_i32, %c0_i32_0, %c0_i32_1 : i32, i32, i32
  }
  func.func @transform_1(%arg0: i32) -> (i32, i32) {
    %c0_i32 = arith.constant 0 : i32
    %c0_i32_0 = arith.constant 0 : i32
    %c0_i32_1 = arith.constant 0 : i32
    return %c0_i32, %c0_i32_0 : i32, i32
  }
  func.func @transform_2(%arg0: i32) -> (i32, i32) {
    %c0_i32 = arith.constant 0 : i32
    %c0_i32_0 = arith.constant 0 : i32
    %c0_i32_1 = arith.constant 0 : i32
    return %c0_i32, %c0_i32_0 : i32, i32
  }
  func.func @transform_3(%arg0: i32) -> (i32, i32) {
    %c0_i32 = arith.constant 0 : i32
    %c0_i32_0 = arith.constant 0 : i32
    %c0_i32_1 = arith.constant 0 : i32
    return %c0_i32, %c0_i32_0 : i32, i32
  }
  func.func @transform_4(%arg0: i32) -> (i32, i32) {
    %c0_i32 = arith.constant 0 : i32
    %c0_i32_0 = arith.constant 0 : i32
    %c0_i32_1 = arith.constant 0 : i32
    return %c0_i32, %c0_i32_0 : i32, i32
  }
  func.func @transform_5(%arg0: i32) -> (i32, i32) {
    %c0_i32 = arith.constant 0 : i32
    %c0_i32_0 = arith.constant 0 : i32
    %c0_i32_1 = arith.constant 0 : i32
    return %c0_i32, %c0_i32_0 : i32, i32
  }
}

</mosaic_0001>

<bundles_post_ra>
// kernel: audio_classifier_forward.9
= control target key start
LH: loop header
LB: loop body
LE: loop exit
PB: predicated region body
PF: predicated region fallthrough
CT: control target
= control target key end

     0   :  { %s370_s0 = inlined_call_operand.vmem [shape: bf16[128,128], index: 0, kind: input, shape index: {}]   ;;  %s371_s1 = inlined_call_operand.vmem [shape: f32[1,128], index: 1, kind: input, shape index: {}]   ;;  %s372_s2 = inlined_call_operand.vmem [shape: f32[1,128], index: 2, kind: input, shape index: {}]   ;;  %s373_s3 = inlined_call_operand.vmem [shape: bf16[128,128], index: 3, kind: output, shape index: {}]  }
   0x1   :  { %v211_v0 = vld [vmem:[%s370_s0] sm:$0xff]   ;;  %v282_v4 = vld [vmem:[%s370_s0 + $0x8] sm:$0xff]   ;;  %v283_v5 = vld [vmem:[%s370_s0 + $0x10] sm:$0xff]  }
   0x2   :  { %v176_v1 = vld [vmem:[%s371_s1] ss:$0 sm:$0xff]  ;;  %v212_v2 = vunpack.c.l.bf16 %v211_v0  ;;  %v213_v3 = vunpack.c.h.bf16 %v211_v0  ;;  %v284_v6 = vld [vmem:[%s370_s0 + $0x18] sm:$0xff]   ;;  %v216_v8 = vunpack.c.l.bf16 %v282_v4  ;;  %v217_v9 = vunpack.c.h.bf16 %v282_v4  ;;  %v286_v25 = vld [vmem:[%s370_s0 + $0x28] sm:$0xff]  }
   0x3   :  { %v177_v7 = vld [vmem:[%s372_s2] ss:$0 sm:$0xff]  ;;  %v220_v10 = vunpack.c.l.bf16 %v283_v5  ;;  %v221_v11 = vunpack.c.h.bf16 %v283_v5  ;;  %v224_v14 = vunpack.c.l.bf16 %v284_v6  ;;  %v225_v15 = vunpack.c.h.bf16 %v284_v6  ;;  %v287_v30 = vld [vmem:[%s370_s0 + $0x30] sm:$0xff]   ;;  %v288_v35 = vld [vmem:[%s370_s0 + $0x38] sm:$0xff]  }
   0x4   :  { %v53_v12 = vmul.f32 %v212_v2, %v176_v1  ;;  %v54_v13 = vmul.f32 %v213_v3, %v176_v1  ;;  %v55_v16 = vmul.f32 %v216_v8, %v176_v1  ;;  %v56_v17 = vmul.f32 %v217_v9, %v176_v1  ;;  %v285_v20 = vld [vmem:[%s370_s0 + $0x20] sm:$0xff]  }
   0x5   :  { %v57_v18 = vmul.f32 %v220_v10, %v176_v1  ;;  %v58_v19 = vmul.f32 %v221_v11, %v176_v1  ;;  %v59_v23 = vmul.f32 %v224_v14, %v176_v1  ;;  %v60_v24 = vmul.f32 %v225_v15, %v176_v1 }
   0x6   :  { %v76_v21 = vadd.f32 %v177_v7, %v53_v12  ;;  %v77_v22 = vadd.f32 %v177_v7, %v54_v13  ;;  %v78_v26 = vadd.f32 %v177_v7, %v55_v16  ;;  %v79_v27 = vadd.f32 %v177_v7, %v56_v17 }
   0x7   :  { %v80_v28 = vadd.f32 %v177_v7, %v57_v18  ;;  %v81_v29 = vadd.f32 %v177_v7, %v58_v19  ;;  %v82_v32 = vadd.f32 %v177_v7, %v59_v23  ;;  %v83_v33 = vadd.f32 %v177_v7, %v60_v24 }
   0x8   :  { %v245_v31 = vpack.c.bf16 %v77_v22, %v76_v21  ;;  %v228_v34 = vunpack.c.l.bf16 %v285_v20  ;;  %v250_v36 = vpack.c.bf16 %v79_v27, %v78_v26  ;;  %v229_v38 = vunpack.c.h.bf16 %v285_v20 }
   0x9   :  { %v255_v37 = vpack.c.bf16 %v81_v29, %v80_v28  ;;  %v232_v39 = vunpack.c.l.bf16 %v286_v25  ;;  %v260_v40 = vpack.c.bf16 %v83_v33, %v82_v32  ;;  %v233_v42 = vunpack.c.h.bf16 %v286_v25 }
   0xa   :  { %246 = vst [vmem:[%s373_s3] sm:$0xff] %v245_v31   ;;  %v61_v41 = vmul.f32 %v228_v34, %v176_v1  ;;  %v236_v43 = vunpack.c.l.bf16 %v287_v30  ;;  %289 = vst [vmem:[%s373_s3 + $0x8] sm:$0xff] %v250_v36   ;;  %v62_v44 = vmul.f32 %v229_v38, %v176_v1  ;;  %v237_v46 = vunpack.c.h.bf16 %v287_v30 }
   0xb   :  { %290 = vst [vmem:[%s373_s3 + $0x10] sm:$0xff] %v255_v37   ;;  %v63_v45 = vmul.f32 %v232_v39, %v176_v1  ;;  %v240_v47 = vunpack.c.l.bf16 %v288_v35  ;;  %291 = vst [vmem:[%s373_s3 + $0x18] sm:$0xff] %v260_v40   ;;  %v64_v49 = vmul.f32 %v233_v42, %v176_v1  ;;  %v241_v51 = vunpack.c.h.bf16 %v288_v35 }
   0xc   :  { %v84_v48 = vadd.f32 %v177_v7, %v61_v41  ;;  %v65_v50 = vmul.f32 %v236_v43, %v176_v1  ;;  %v85_v52 = vadd.f32 %v177_v7, %v62_v44  ;;  %v66_v54 = vmul.f32 %v237_v46, %v176_v1 }
   0xd   :  { %v86_v53 = vadd.f32 %v177_v7, %v63_v45  ;;  %v67_v55 = vmul.f32 %v240_v47, %v176_v1  ;;  %v87_v56 = vadd.f32 %v177_v7, %v64_v49  ;;  %v68_v58 = vmul.f32 %v241_v51, %v176_v1 }
   0xe   :  { %v88_v57 = vadd.f32 %v177_v7, %v65_v50  ;;  %v265_v59 = vpack.c.bf16 %v85_v52, %v84_v48  ;;  %v89_v60 = vadd.f32 %v177_v7, %v66_v54 }
   0xf   :  { %v90_v61 = vadd.f32 %v177_v7, %v67_v55  ;;  %v270_v62 = vpack.c.bf16 %v87_v56, %v86_v53  ;;  %v91_v63 = vadd.f32 %v177_v7, %v68_v58 }
  0x10   :  { %292 = vst [vmem:[%s373_s3 + $0x20] sm:$0xff] %v265_v59   ;;  %v275_v0 = vpack.c.bf16 %v89_v60, %v88_v57 }
  0x11   :  { %293 = vst [vmem:[%s373_s3 + $0x28] sm:$0xff] %v270_v62   ;;  %v280_v2 = vpack.c.bf16 %v91_v63, %v90_v61 }
  0x12   :  { %294 = vst [vmem:[%s373_s3 + $0x30] sm:$0xff] %v275_v0  }
  0x13   :  { %295 = vst [vmem:[%s373_s3 + $0x38] sm:$0xff] %v280_v2  }

// kernel: audio_classifier_forward.8
= control target key start
LH: loop header
LB: loop body
LE: loop exit
PB: predicated region body
PF: predicated region fallthrough
CT: control target
= control target key end

     0   :  { %vm470_vm0 = vcmask 1040384   ;;  %s802_s1 = inlined_call_operand.vmem [shape: bf16[128,128], index: 1, kind: input, shape index: {}]   ;;  %s803_s0 = inlined_call_operand.vmem [shape: bf16[128,128], index: 0, kind: input, shape index: {}]   ;;  %s804_s2 = inlined_call_operand.vmem [shape: f32[1,128], index: 2, kind: input, shape index: {}]   ;;  %s805_s3 = inlined_call_operand.vmem [shape: bf16[128,128], index: 3, kind: output, shape index: {0}]   ;;  %s806_s4 = inlined_call_operand.vmem [shape: f32[1,2,128], index: 4, kind: output, shape index: {1}]  }
   0x1   :  { %v641_v0 = vld [vmem:[%s802_s1] sm:$0xff]   ;;  %v642_v1 = vld [vmem:[%s802_s1 + $0x8] sm:$0xff]   ;;  %v643_v2 = vld [vmem:[%s802_s1 + $0x10] sm:$0xff]  }
   0x2   :  { %593 = vmatprep.subr.bf16.mxu0 %v641_v0  ;;  %625 = vmatprep.subr.bf16.mxu1 %v641_v0  ;;  %v644_v3 = vld [vmem:[%s802_s1 + $0x18] sm:$0xff]   ;;  %v649_v4 = vld [vmem:[%s803_s0] sm:$0xff]   ;;  %v646_v7 = vld [vmem:[%s802_s1 + $0x28] sm:$0xff]  }
   0x3   :  { %594 = vmatpush3.bf16.msra.mxu0 %v641_v0  ;;  %633 = vmatpush3.bf16.msra.mxu1 %v641_v0  ;;  %v645_v5 = vld [vmem:[%s802_s1 + $0x20] sm:$0xff]   ;;  %v647_v8 = vld [vmem:[%s802_s1 + $0x30] sm:$0xff]   ;;  %v648_v9 = vld [vmem:[%s802_s1 + $0x38] sm:$0xff]  }
   0x4   :  { %595 = vmatprep.subr.bf16.mxu0 %v642_v1  ;;  %626 = vmatprep.subr.bf16.mxu1 %v642_v1  ;;  %v653_v6 = vld [vmem:[%s803_s0 + $0x20] sm:$0xff]   ;;  %v650_v10 = vld [vmem:[%s803_s0 + $0x8] sm:$0xff]   ;;  %v651_v12 = vld [vmem:[%s803_s0 + $0x10] sm:$0xff]  }
   0x5   :  { %609 = vmatprep.mubr.bf16.mxu0 %v649_v4  ;;  %617 = vmatprep.mubr.bf16.mxu1 %v653_v6  ;;  %v654_v11 = vld [vmem:[%s803_s0 + $0x28] sm:$0xff]   ;;  %v655_v13 = vld [vmem:[%s803_s0 + $0x30] sm:$0xff]   ;;  %v652_v14 = vld [vmem:[%s803_s0 + $0x18] sm:$0xff]  }
   0x6   :  { %v656_v15 = vld [vmem:[%s803_s0 + $0x38] sm:$0xff]   ;;  %v733_v16 = vld [vmem:[%s804_s2] ss:$0 sm:$0xff] }
   0x7   :  { %596 = vmatpush3.bf16.msra.mxu0 %v642_v1  ;;  %634 = vmatpush3.bf16.msra.mxu1 %v642_v1 }
   0x8   :  { %597 = vmatprep.subr.bf16.mxu0 %v643_v2  ;;  %627 = vmatprep.subr.bf16.mxu1 %v643_v2 }
   0xb   :  { %598 = vmatpush3.bf16.msra.mxu0 %v643_v2  ;;  %635 = vmatpush3.bf16.msra.mxu1 %v643_v2 }
   0xc   :  { %599 = vmatprep.subr.bf16.mxu0 %v644_v3  ;;  %628 = vmatprep.subr.bf16.mxu1 %v644_v3 }
   0xf   :  { %600 = vmatpush3.bf16.msra.mxu0 %v644_v3  ;;  %636 = vmatpush3.bf16.msra.mxu1 %v644_v3 }
  0x10   :  { %601 = vmatprep.subr.bf16.mxu0 %v645_v5  ;;  %629 = vmatprep.subr.bf16.mxu1 %v645_v5 }
  0x13   :  { %602 = vmatpush3.bf16.msra.mxu0 %v645_v5  ;;  %637 = vmatpush3.bf16.msra.mxu1 %v645_v5 }
  0x14   :  { %603 = vmatprep.subr.bf16.mxu0 %v646_v7  ;;  %630 = vmatprep.subr.bf16.mxu1 %v646_v7 }
  0x17   :  { %604 = vmatpush3.bf16.msra.mxu0 %v646_v7  ;;  %638 = vmatpush3.bf16.msra.mxu1 %v646_v7 }
  0x18   :  { %605 = vmatprep.subr.bf16.mxu0 %v647_v8  ;;  %631 = vmatprep.subr.bf16.mxu1 %v647_v8 }
  0x1b   :  { %606 = vmatpush3.bf16.msra.mxu0 %v647_v8  ;;  %639 = vmatpush3.bf16.msra.mxu1 %v647_v8 }
  0x1c   :  { %607 = vmatprep.subr.bf16.mxu0 %v648_v9  ;;  %632 = vmatprep.subr.bf16.mxu1 %v648_v9 }
  0x1f   :  { %608 = vmatpush3.bf16.msra.mxu0 %v648_v9  ;;  %640 = vmatpush3.bf16.msra.mxu1 %v648_v9 }
  0x22   :  { %610 = vmatmul.mubr.bf16.vlgmr.msra.gmra.mrb[0].mxu0 %v650_v10  ;;  %618 = vmatmul.mubr.bf16.vlgmr.msra.gmra.mrb[0].mxu1 %v654_v11 }
  0x23   :  { %613 = vmatprep.mubr.bf16.mxu0 %v651_v12  ;;  %621 = vmatprep.mubr.bf16.mxu1 %v655_v13 }
  0x2a   :  { %614 = vmatmul.mubr.bf16.gmra.mrb[4].mxu0 %v652_v14  ;;  %622 = vmatmul.mubr.bf16.gmra.mrb[4].mxu1 %v656_v15 }
  0xf5   :  { %v611_v17 = vpop.f32.mrb[0].mxu0  ;;  %v619_v18 = vpop.f32.mrb[0].mxu1 }
  0xf6   :  { %v195_v19 = vadd.f32 %v611_v17, %v733_v16  ;;  %v186_v20 = vpop.f32.mrb[1].mxu0  ;;  %v227_v21 = vadd.f32 %v619_v18, %v733_v16  ;;  %v218_v22 = vpop.f32.mrb[1].mxu1 }
  0xf7   :  { %v187_v23 = vadd.f32 %v733_v16, %v186_v20  ;;  %v612_v24 = vpop.f32.mrb[2].mxu0  ;;  %v219_v25 = vadd.f32 %v733_v16, %v218_v22  ;;  %v620_v26 = vpop.f32.mrb[2].mxu1 }
  0xf8   :  { %v198_v27 = vadd.f32 %v612_v24, %v733_v16  ;;  %v189_v28 = vpop.f32.mrb[3].mxu0  ;;  %v740_v29 = vmax.f32 %v227_v21, 0.0  ;;  %v230_v30 = vadd.f32 %v620_v26, %v733_v16  ;;  %v221_v31 = vpop.f32.mrb[3].mxu1  ;;  %v251_v36 = vmax.f32 %v195_v19, 0.0 }
  0xf9   :  { %v249_v32 = vmax.f32 %v187_v23, 0.0  ;;  %v190_v33 = vadd.f32 %v733_v16, %v189_v28  ;;  %v744_v34 = vmax.f32 %v219_v25, 0.0  ;;  %v222_v35 = vadd.f32 %v733_v16, %v221_v31 }
  0xfa   :  { %v252_v37 = vmax.f32 %v198_v27, 0.0  ;;  %v747_v38 = vmax.f32 %v230_v30, 0.0  ;;  %v435_v54 = vmul.f32 %v251_v36, %v251_v36 }
  0xfb   :  { %v250_v39 = vmax.f32 %v190_v33, 0.0  ;;  %v749_v40 = vmax.f32 %v222_v35, 0.0  ;;  %v433_v41 = vmul.f32 %v249_v32, %v249_v32  ;;  %v441_v31 = vmul.f32 %v744_v34, %v744_v34 }
  0xfc   :  { %v538_v42 = vpack.c.bf16 %v252_v37, %v251_v36  ;;  %v558_v43 = vpack.c.bf16 %v747_v38, %v740_v29  ;;  %v436_v60 = vmul.f32 %v252_v37, %v252_v37 }
  0xfd   :  { %v533_v44 = vpack.c.bf16 %v250_v39, %v249_v32  ;;  %v412_v45 = vadd.f32 %v250_v39, %v249_v32  ;;  %v434_v46 = vmul.f32 %v250_v39, %v250_v39  ;;  %v615_v47 = vpop.f32.mrb[4].mxu0  ;;  %v553_v48 = vpack.c.bf16 %v749_v40, %v744_v34  ;;  %v623_v49 = vpop.f32.mrb[4].mxu1 }
  0xfe   :  { %570 = vst [vmem:[%s805_s3 + $0x8] sm:$0xff] %v538_v42   ;;  %v211_v50 = vadd.f32 %v615_v47, %v733_v16  ;;  %v202_v51 = vpop.f32.mrb[5].mxu0  ;;  %574 = vst [vmem:[%s805_s3 + $0x28] sm:$0xff] %v558_v43   ;;  %v243_v52 = vadd.f32 %v623_v49, %v733_v16  ;;  %v234_v53 = vpop.f32.mrb[5].mxu1  ;;  %v443_v39 = vmul.f32 %v740_v29, %v740_v29 }
  0xff   :  { %534 = vst [vmem:[%s805_s3] sm:$0xff] %v533_v44   ;;  %v413_v55 = vadd.f32 %v412_v45, %v251_v36  ;;  %v449_v56 = vadd.f32 %v434_v46, %v433_v41  ;;  %v203_v57 = vadd.f32 %v733_v16, %v202_v51  ;;  %v616_v58 = vpop.f32.mrb[6].mxu0  ;;  %573 = vst [vmem:[%s805_s3 + $0x20] sm:$0xff] %v553_v48   ;;  %v624_v59 = vpop.f32.mrb[6].mxu1 }
 0x100   :  { %v214_v61 = vadd.f32 %v616_v58, %v733_v16  ;;  %v205_v62 = vpop.f32.mrb[7].mxu0  ;;  %v246_v63 = vadd.f32 %v624_v59, %v733_v16  ;;  %v237_v0 = vpop.f32.mrb[7].mxu1  ;;  %v255_v5 = vmax.f32 %v211_v50, 0.0  ;;  %v263_v7 = vmax.f32 %v243_v52, 0.0 }
 0x101   :  { %v450_v1 = vadd.f32 %v449_v56, %v435_v54  ;;  %v253_v2 = vmax.f32 %v203_v57, 0.0  ;;  %v414_v3 = vadd.f32 %v413_v55, %v252_v37  ;;  %v206_v4 = vadd.f32 %v733_v16, %v205_v62 }
 0x102   :  { %v256_v6 = vmax.f32 %v214_v61, 0.0  ;;  %v235_v8 = vadd.f32 %v733_v16, %v234_v53  ;;  %v264_v14 = vmax.f32 %v246_v63, 0.0  ;;  %v238_v22 = vadd.f32 %v733_v16, %v237_v0 }
 0x103   :  { %v415_v9 = vadd.f32 %v414_v3, %v253_v2  ;;  %v437_v10 = vmul.f32 %v253_v2, %v253_v2  ;;  %v451_v11 = vadd.f32 %v450_v1, %v436_v60  ;;  %v254_v12 = vmax.f32 %v206_v4, 0.0 }
 0x104   :  { %v548_v13 = vpack.c.bf16 %v256_v6, %v255_v5  ;;  %v261_v20 = vmax.f32 %v235_v8, 0.0  ;;  %v568_v21 = vpack.c.bf16 %v264_v14, %v263_v7  ;;  %v439_v23 = vmul.f32 %v255_v5, %v255_v5 }
 0x105   :  { %v452_v15 = vadd.f32 %v451_v11, %v437_v10  ;;  %v543_v17 = vpack.c.bf16 %v254_v12, %v253_v2  ;;  %v416_v18 = vadd.f32 %v415_v9, %v254_v12  ;;  %v438_v19 = vmul.f32 %v254_v12, %v254_v12 }
 0x106   :  { %572 = vst [vmem:[%s805_s3 + $0x18] sm:$0xff] %v548_v13   ;;  %576 = vst [vmem:[%s805_s3 + $0x38] sm:$0xff] %v568_v21   ;;  %v262_v26 = vmax.f32 %v238_v22, 0.0  ;;  %v440_v27 = vmul.f32 %v256_v6, %v256_v6  ;;  %v442_v37 = vmul.f32 %v749_v40, %v749_v40  ;;  %v445_v45 = vmul.f32 %v261_v20, %v261_v20 }
 0x107   :  { %571 = vst [vmem:[%s805_s3 + $0x10] sm:$0xff] %v543_v17   ;;  %v417_v24 = vadd.f32 %v416_v18, %v255_v5  ;;  %v453_v25 = vadd.f32 %v452_v15, %v438_v19  ;;  %v447_v51 = vmul.f32 %v263_v7, %v263_v7  ;;  %v448_v53 = vmul.f32 %v264_v14, %v264_v14 }
 0x108   :  { %v563_v32 = vpack.c.bf16 %v262_v26, %v261_v20  ;;  %v446_v50 = vmul.f32 %v262_v26, %v262_v26 }
 0x109   :  { %v454_v28 = vadd.f32 %v453_v25, %v439_v23  ;;  %v418_v30 = vadd.f32 %v417_v24, %v256_v6 }
 0x10a   :  { %575 = vst [vmem:[%s805_s3 + $0x30] sm:$0xff] %v563_v32  }
 0x10b   :  { %v419_v16 = vadd.f32 %v418_v30, %v744_v34  ;;  %v455_v33 = vadd.f32 %v454_v28, %v440_v27  ;;  %v444_v34 = vmul.f32 %v747_v38, %v747_v38 }
 0x10d   :  { %v456_v35 = vadd.f32 %v455_v33, %v441_v31  ;;  %v420_v36 = vadd.f32 %v419_v16, %v749_v40 }
 0x10f   :  { %v421_v41 = vadd.f32 %v420_v36, %v740_v29  ;;  %v457_v42 = vadd.f32 %v456_v35, %v442_v37 }
 0x111   :  { %v458_v43 = vadd.f32 %v457_v42, %v443_v39  ;;  %v422_v44 = vadd.f32 %v421_v41, %v747_v38 }
 0x113   :  { %v423_v46 = vadd.f32 %v422_v44, %v261_v20  ;;  %v459_v47 = vadd.f32 %v458_v43, %v444_v34 }
 0x115   :  { %v460_v48 = vadd.f32 %v459_v47, %v445_v45  ;;  %v424_v49 = vadd.f32 %v423_v46, %v262_v26 }
 0x117   :  { %v425_v40 = vadd.f32 %v424_v49, %v263_v7  ;;  %v461_v52 = vadd.f32 %v460_v48, %v446_v50 }
 0x119   :  { %v426_v54 = vadd.f32 %v425_v40, %v264_v14  ;;  %v462_v55 = vadd.f32 %v461_v52, %v447_v51 }
 0x11b   :  { %v427_v29 = vrot.slane %v426_v54, 4  ;;  %v463_v56 = vadd.f32 %v462_v55, %v448_v53 }
 0x11d   :  { %v428_v57 = vadd.f32 %v427_v29, %v426_v54  ;;  %v464_v58 = vrot.slane %v463_v56, 4 }
 0x11f   :  { %v429_v59 = vrot.slane %v428_v57, 2  ;;  %v465_v60 = vadd.f32 %v464_v58, %v463_v56 }
 0x121   :  { %v430_v61 = vadd.f32 %v429_v59, %v428_v57  ;;  %v466_v38 = vrot.slane %v465_v60, 2 }
 0x123   :  { %v431_v62 = vrot.slane %v430_v61, 1  ;;  %v467_v63 = vadd.f32 %v466_v38, %v465_v60 }
 0x125   :  { %v468_v0 = vrot.slane %v467_v63, 1  ;;  %v432_v1 = vadd.f32 %v431_v62, %v430_v61 }
 0x127   :  { %v469_v2 = vadd.f32 %v468_v0, %v467_v63 }
 0x129   :  { %v471_v3 = vsel %vm470_vm0, %v432_v1, %v469_v2 }
 0x12a   :  { %472 = vst [vmem:[%s806_s4] sm:$0x3] %v471_v3 }

// kernel: audio_classifier_forward.10
= control target key start
LH: loop header
LB: loop body
LE: loop exit
PB: predicated region body
PF: predicated region fallthrough
CT: control target
= control target key end

     0   :  { %vm290_vm0 = vcmask 1040384   ;;  %s504_s1 = inlined_call_operand.vmem [shape: bf16[256,128], index: 1, kind: input, shape index: {}]   ;;  %s505_s0 = inlined_call_operand.vmem [shape: bf16[32,256], index: 0, kind: input, shape index: {}]   ;;  %s506_s2 = inlined_call_operand.vmem [shape: f32[1,128], index: 2, kind: input, shape index: {}]   ;;  %s507_s3 = inlined_call_operand.vmem [shape: bf16[32,128], index: 3, kind: output, shape index: {0}]   ;;  %s508_s4 = inlined_call_operand.vmem [shape: f32[1,2,128], index: 4, kind: output, shape index: {1}]  }
   0x1   :  { %v385_v0 = vld [vmem:[%s504_s1 + $0x40] sm:$0xff]   ;;  %v387_v2 = vld [vmem:[%s504_s1 + $0x48] sm:$0xff]   ;;  %v389_v4 = vld [vmem:[%s504_s1 + $0x50] sm:$0xff]  }
   0x2   :  { %v386_v1 = vld [vmem:[%s504_s1] sm:$0xff]   ;;  %341 = vmatprep.subr.bf16.mxu0 %v385_v0  ;;  %369 = vmatprep.subr.bf16.mxu1 %v385_v0  ;;  %v388_v3 = vld [vmem:[%s504_s1 + $0x8] sm:$0xff]   ;;  %v390_v5 = vld [vmem:[%s504_s1 + $0x10] sm:$0xff]  }
   0x3   :  { %342 = vmatpush3.bf16.msra.mxu0 %v386_v1  ;;  %377 = vmatpush3.bf16.msra.mxu1 %v386_v1  ;;  %v391_v6 = vld [vmem:[%s504_s1 + $0x58] sm:$0xff]   ;;  %v393_v8 = vld [vmem:[%s504_s1 + $0x60] sm:$0xff]   ;;  %v395_v10 = vld [vmem:[%s504_s1 + $0x68] sm:$0xff]  }
   0x4   :  { %343 = vmatprep.subr.bf16.mxu0 %v387_v2  ;;  %370 = vmatprep.subr.bf16.mxu1 %v387_v2  ;;  %v392_v7 = vld [vmem:[%s504_s1 + $0x18] sm:$0xff]   ;;  %v394_v9 = vld [vmem:[%s504_s1 + $0x20] sm:$0xff]   ;;  %v396_v13 = vld [vmem:[%s504_s1 + $0x28] sm:$0xff]  }
   0x5   :  { %v403_v11 = vld [vmem:[%s505_s0 + $0x4] ss:$8 sps:$4 sm:$0xff]   ;;  %v406_v12 = vld [vmem:[%s505_s0 + $0x14] ss:$8 sps:$4 sm:$0xff]   ;;  %v401_v18 = vld [vmem:[%s505_s0] ss:$8 sps:$4 sm:$0xff]  }
   0x6   :  { %v397_v14 = vld [vmem:[%s504_s1 + $0x70] sm:$0xff]   ;;  %208 = vmatprep.mubr.bf16.mxu0 %v403_v11  ;;  %216 = vmatprep.mubr.bf16.mxu1 %v406_v12  ;;  %v399_v16 = vld [vmem:[%s504_s1 + $0x78] sm:$0xff]   ;;  %v301_v22 = vld [vmem:[%s506_s2] ss:$0 sm:$0xff] }
   0x7   :  { %344 = vmatpush3.bf16.msra.mxu0 %v388_v3  ;;  %378 = vmatpush3.bf16.msra.mxu1 %v388_v3  ;;  %v398_v15 = vld [vmem:[%s504_s1 + $0x30] sm:$0xff]   ;;  %v400_v17 = vld [vmem:[%s504_s1 + $0x38] sm:$0xff]  }
   0x8   :  { %345 = vmatprep.subr.bf16.mxu0 %v389_v4  ;;  %371 = vmatprep.subr.bf16.mxu1 %v389_v4  ;;  %v404_v19 = vld [vmem:[%s505_s0 + $0x10] ss:$8 sps:$4 sm:$0xff]  }
   0xb   :  { %346 = vmatpush3.bf16.msra.mxu0 %v390_v5  ;;  %379 = vmatpush3.bf16.msra.mxu1 %v390_v5 }
   0xc   :  { %347 = vmatprep.subr.bf16.mxu0 %v391_v6  ;;  %372 = vmatprep.subr.bf16.mxu1 %v391_v6 }
   0xf   :  { %348 = vmatpush3.bf16.msra.mxu0 %v392_v7  ;;  %380 = vmatpush3.bf16.msra.mxu1 %v392_v7 }
  0x10   :  { %349 = vmatprep.subr.bf16.mxu0 %v393_v8  ;;  %373 = vmatprep.subr.bf16.mxu1 %v393_v8 }
  0x13   :  { %350 = vmatpush3.bf16.msra.mxu0 %v394_v9  ;;  %381 = vmatpush3.bf16.msra.mxu1 %v394_v9 }
  0x14   :  { %351 = vmatprep.subr.bf16.mxu0 %v395_v10  ;;  %374 = vmatprep.subr.bf16.mxu1 %v395_v10 }
  0x17   :  { %352 = vmatpush3.bf16.msra.mxu0 %v396_v13  ;;  %382 = vmatpush3.bf16.msra.mxu1 %v396_v13 }
  0x18   :  { %353 = vmatprep.subr.bf16.mxu0 %v397_v14  ;;  %375 = vmatprep.subr.bf16.mxu1 %v397_v14 }
  0x1b   :  { %354 = vmatpush3.bf16.msra.mxu0 %v398_v15  ;;  %383 = vmatpush3.bf16.msra.mxu1 %v398_v15 }
  0x1c   :  { %355 = vmatprep.subr.bf16.mxu0 %v399_v16  ;;  %376 = vmatprep.subr.bf16.mxu1 %v399_v16 }
  0x1f   :  { %356 = vmatpush3.bf16.msra.mxu0 %v400_v17  ;;  %384 = vmatpush3.bf16.msra.mxu1 %v400_v17 }
  0x22   :  { %209 = vmatmul.mubr.bf16.vlgmr.msra.gmra.mrb[0].mxu0 %v401_v18  ;;  %217 = vmatmul.mubr.bf16.vlgmr.msra.gmra.mrb[0].mxu1 %v404_v19 }
  0xf5   :  { %v357_v20 = vpop.f32.mrb[0].mxu0  ;;  %v363_v21 = vpop.f32.mrb[0].mxu1 }
  0xf6   :  { %v358_v23 = vpop.f32.mrb[1].mxu0  ;;  %v364_v24 = vpop.f32.mrb[1].mxu1 }
  0xf7   :  { %v359_v25 = vadd.f32 %v358_v23, %v357_v20  ;;  %v360_v26 = vpop.f32.mrb[2].mxu0  ;;  %v365_v27 = vadd.f32 %v364_v24, %v363_v21  ;;  %v366_v28 = vpop.f32.mrb[2].mxu1 }
  0xf8   :  { %v361_v29 = vpop.f32.mrb[3].mxu0  ;;  %v367_v30 = vpop.f32.mrb[3].mxu1 }
  0xf9   :  { %v211_v31 = vadd.f32 %v359_v25, %v301_v22  ;;  %v219_v32 = vadd.f32 %v365_v27, %v301_v22  ;;  %v362_v33 = vadd.f32 %v361_v29, %v360_v26  ;;  %v368_v34 = vadd.f32 %v367_v30, %v366_v28 }
  0xfb   :  { %v225_v35 = vmax.f32 %v211_v31, 0.0  ;;  %v227_v36 = vmax.f32 %v219_v32, 0.0  ;;  %v214_v37 = vadd.f32 %v362_v33, %v301_v22  ;;  %v222_v38 = vadd.f32 %v368_v34, %v301_v22 }
  0xfd   :  { %v226_v39 = vmax.f32 %v214_v37, 0.0  ;;  %v228_v40 = vmax.f32 %v222_v38, 0.0  ;;  %v277_v41 = vmul.f32 %v225_v35, %v225_v35  ;;  %v279_v42 = vmul.f32 %v227_v36, %v227_v36 }
  0xff   :  { %v333_v43 = vpack.c.bf16 %v226_v39, %v225_v35  ;;  %v268_v44 = vadd.f32 %v226_v39, %v225_v35  ;;  %v278_v45 = vmul.f32 %v226_v39, %v226_v39  ;;  %v338_v46 = vpack.c.bf16 %v228_v40, %v227_v36 }
 0x100   :  { %v280_v50 = vmul.f32 %v228_v40, %v228_v40 }
 0x101   :  { %334 = vst [vmem:[%s507_s3] sm:$0xff] %v333_v43   ;;  %v281_v47 = vadd.f32 %v278_v45, %v277_v41  ;;  %340 = vst [vmem:[%s507_s3 + $0x8] sm:$0xff] %v338_v46   ;;  %v269_v48 = vadd.f32 %v268_v44, %v227_v36 }
 0x103   :  { %v270_v49 = vadd.f32 %v269_v48, %v228_v40  ;;  %v282_v51 = vadd.f32 %v281_v47, %v279_v42 }
 0x105   :  { %v271_v52 = vrot.slane %v270_v49, 4  ;;  %v283_v53 = vadd.f32 %v282_v51, %v280_v50 }
 0x107   :  { %v272_v54 = vadd.f32 %v271_v52, %v270_v49  ;;  %v284_v55 = vrot.slane %v283_v53, 4 }
 0x109   :  { %v273_v56 = vrot.slane %v272_v54, 2  ;;  %v285_v57 = vadd.f32 %v284_v55, %v283_v53 }
 0x10b   :  { %v274_v58 = vadd.f32 %v273_v56, %v272_v54  ;;  %v286_v59 = vrot.slane %v285_v57, 2 }
 0x10d   :  { %v275_v60 = vrot.slane %v274_v58, 1  ;;  %v287_v61 = vadd.f32 %v286_v59, %v285_v57 }
 0x10f   :  { %v288_v62 = vrot.slane %v287_v61, 1  ;;  %v276_v63 = vadd.f32 %v275_v60, %v274_v58 }
 0x111   :  { %v289_v0 = vadd.f32 %v288_v62, %v287_v61 }
 0x113   :  { %v291_v1 = vsel %vm290_vm0, %v276_v63, %v289_v0 }
 0x114   :  { %292 = vst [vmem:[%s508_s4] sm:$0x3] %v291_v1 }

// kernel: audio_classifier_forward.11
= control target key start
LH: loop header
LB: loop body
LE: loop exit
PB: predicated region body
PF: predicated region fallthrough
CT: control target
= control target key end

     0   :  { %s136_s0 = inlined_call_operand.vmem [shape: bf16[32,128], index: 0, kind: input, shape index: {}]   ;;  %s137_s1 = inlined_call_operand.vmem [shape: f32[1,128], index: 1, kind: input, shape index: {}]   ;;  %s138_s2 = inlined_call_operand.vmem [shape: f32[1,128], index: 2, kind: input, shape index: {}]   ;;  %s139_s3 = inlined_call_operand.vmem [shape: bf16[32,128], index: 3, kind: output, shape index: {}]  }
   0x1   :  { %v79_v0 = vld [vmem:[%s136_s0] sm:$0xff]   ;;  %v96_v4 = vld [vmem:[%s136_s0 + $0x8] sm:$0xff]  }
   0x2   :  { %v68_v1 = vld [vmem:[%s137_s1] ss:$0 sm:$0xff]  ;;  %v80_v2 = vunpack.c.l.bf16 %v79_v0  ;;  %v81_v3 = vunpack.c.h.bf16 %v79_v0  ;;  %v84_v6 = vunpack.c.l.bf16 %v96_v4  ;;  %v85_v7 = vunpack.c.h.bf16 %v96_v4 }
   0x3   :  { %v69_v5 = vld [vmem:[%s138_s2] ss:$0 sm:$0xff] }
   0x4   :  { %v29_v8 = vmul.f32 %v80_v2, %v68_v1  ;;  %v30_v9 = vmul.f32 %v81_v3, %v68_v1  ;;  %v31_v10 = vmul.f32 %v84_v6, %v68_v1  ;;  %v32_v11 = vmul.f32 %v85_v7, %v68_v1 }
   0x6   :  { %v40_v12 = vadd.f32 %v69_v5, %v29_v8  ;;  %v41_v13 = vadd.f32 %v69_v5, %v30_v9  ;;  %v42_v14 = vadd.f32 %v69_v5, %v31_v10  ;;  %v43_v15 = vadd.f32 %v69_v5, %v32_v11 }
   0x8   :  { %v89_v16 = vpack.c.bf16 %v41_v13, %v40_v12  ;;  %v94_v17 = vpack.c.bf16 %v43_v15, %v42_v14 }
   0xa   :  { %90 = vst [vmem:[%s139_s3] sm:$0xff] %v89_v16   ;;  %97 = vst [vmem:[%s139_s3 + $0x8] sm:$0xff] %v94_v17  }

// kernel: audio_classifier_forward.13
= control target key start
LH: loop header
LB: loop body
LE: loop exit
PB: predicated region body
PF: predicated region fallthrough
CT: control target
= control target key end

     0   :  { %s97_s0 = inlined_call_operand.vmem [shape: bf16[16,128], index: 0, kind: input, shape index: {}]   ;;  %s98_s1 = inlined_call_operand.vmem [shape: f32[1,128], index: 1, kind: input, shape index: {}]   ;;  %s99_s2 = inlined_call_operand.vmem [shape: f32[1,128], index: 2, kind: input, shape index: {}]   ;;  %s100_s3 = inlined_call_operand.vmem [shape: bf16[16,128], index: 3, kind: output, shape index: {}]  }
   0x1   :  { %v57_v0 = vld [vmem:[%s97_s0] sm:$0xff]  }
   0x2   :  { %v50_v1 = vld [vmem:[%s98_s1] ss:$0 sm:$0xff]  ;;  %v58_v2 = vunpack.c.l.bf16 %v57_v0  ;;  %v59_v3 = vunpack.c.h.bf16 %v57_v0 }
   0x3   :  { %v51_v4 = vld [vmem:[%s99_s2] ss:$0 sm:$0xff] }
   0x4   :  { %v25_v5 = vmul.f32 %v58_v2, %v50_v1  ;;  %v26_v6 = vmul.f32 %v59_v3, %v50_v1 }
   0x6   :  { %v34_v7 = vadd.f32 %v51_v4, %v25_v5  ;;  %v35_v8 = vadd.f32 %v51_v4, %v26_v6 }
   0x8   :  { %v63_v9 = vpack.c.bf16 %v35_v8, %v34_v7 }
   0xa   :  { %64 = vst [vmem:[%s100_s3] sm:$0xff] %v63_v9  }

// kernel: audio_classifier_forward.12
= control target key start
LH: loop header
LB: loop body
LE: loop exit
PB: predicated region body
PF: predicated region fallthrough
CT: control target
= control target key end

     0   :  { %v486_v1 = vmov 0.0   ;;  %vm487_vm0 = vmmov 0   ;;  %vm357_vm1 = vcmask 1040384   ;;  %s603_s1 = inlined_call_operand.vmem [shape: bf16[384,128], index: 1, kind: input, shape index: {}]   ;;  %s604_s0 = inlined_call_operand.vmem [shape: bf16[16,384], index: 0, kind: input, shape index: {}]   ;;  %s605_s2 = inlined_call_operand.vmem [shape: f32[1,128], index: 2, kind: input, shape index: {}]   ;;  %s606_s3 = inlined_call_operand.vmem [shape: bf16[16,128], index: 3, kind: output, shape index: {0}]   ;;  %s607_s4 = inlined_call_operand.vmem [shape: f32[1,2,128], index: 4, kind: output, shape index: {1}]  }
   0x1   :  { %v458_v0 = vld [vmem:[%s603_s1 + $0x40] sm:$0xff]   ;;  %436 = vmatprep.subr.bf16.mxu1 %v486_v1  ;;  %452 = vmatprep.mubr.msk.bf16.mxu1 %vm487_vm0, %v486_v1  ;;  %v461_v4 = vld [vmem:[%s603_s1 + $0x48] sm:$0xff]   ;;  %v464_v7 = vld [vmem:[%s603_s1 + $0x50] sm:$0xff]  }
   0x2   :  { %v459_v2 = vld [vmem:[%s603_s1] sm:$0xff]   ;;  %405 = vmatprep.subr.bf16.mxu0 %v458_v0  ;;  %v462_v5 = vld [vmem:[%s603_s1 + $0x8] sm:$0xff]   ;;  %v465_v8 = vld [vmem:[%s603_s1 + $0x10] sm:$0xff]  }
   0x3   :  { %v460_v3 = vld [vmem:[%s603_s1 + $0x80] sm:$0xff]   ;;  %406 = vmatpush3.bf16.msra.mxu0 %v459_v2  ;;  %v463_v6 = vld [vmem:[%s603_s1 + $0x88] sm:$0xff]   ;;  %v466_v9 = vld [vmem:[%s603_s1 + $0x90] sm:$0xff]  }
   0x4   :  { %437 = vmatpush3.bf16.msra.mxu1 %v460_v3  ;;  %407 = vmatprep.subr.bf16.mxu0 %v461_v4  ;;  %v467_v10 = vld [vmem:[%s603_s1 + $0x58] sm:$0xff]   ;;  %v470_v13 = vld [vmem:[%s603_s1 + $0x60] sm:$0xff]   ;;  %v473_v16 = vld [vmem:[%s603_s1 + $0x68] sm:$0xff]  }
   0x5   :  { %438 = vmatprep.subr.bf16.mxu1 %v486_v1  ;;  %v468_v11 = vld [vmem:[%s603_s1 + $0x18] sm:$0xff]   ;;  %v471_v14 = vld [vmem:[%s603_s1 + $0x20] sm:$0xff]   ;;  %v474_v17 = vld [vmem:[%s603_s1 + $0x28] sm:$0xff]  }
   0x6   :  { %v469_v12 = vld [vmem:[%s603_s1 + $0x98] sm:$0xff]   ;;  %v472_v15 = vld [vmem:[%s603_s1 + $0xa0] sm:$0xff]   ;;  %v475_v18 = vld [vmem:[%s603_s1 + $0xa8] sm:$0xff]  }
   0x7   :  { %408 = vmatpush3.bf16.msra.mxu0 %v462_v5  ;;  %v476_v19 = vld [vmem:[%s603_s1 + $0x70] sm:$0xff]   ;;  %v479_v22 = vld [vmem:[%s603_s1 + $0x78] sm:$0xff]   ;;  %v481_v26 = vld [vmem:[%s604_s0] ss:$12 sps:$4 sm:$0xff]  }
   0x8   :  { %439 = vmatpush3.bf16.msra.mxu1 %v463_v6  ;;  %409 = vmatprep.subr.bf16.mxu0 %v464_v7  ;;  %v477_v20 = vld [vmem:[%s603_s1 + $0x30] sm:$0xff]   ;;  %v480_v24 = vld [vmem:[%s603_s1 + $0x38] sm:$0xff]   ;;  %v368_v30 = vld [vmem:[%s605_s2] ss:$0 sm:$0xff] }
   0x9   :  { %440 = vmatprep.subr.bf16.mxu1 %v486_v1  ;;  %v478_v21 = vld [vmem:[%s603_s1 + $0xb0] sm:$0xff]   ;;  %v484_v25 = vld [vmem:[%s603_s1 + $0xb8] sm:$0xff]  }
   0xa   :  { %v483_v23 = vld [vmem:[%s604_s0 + $0x4] ss:$12 sps:$4 sm:$0xff]   ;;  %v485_v27 = vld [vmem:[%s604_s0 + $0x8] ss:$12 sps:$4 sm:$0xff]  }
   0xb   :  { %410 = vmatpush3.bf16.msra.mxu0 %v465_v8  ;;  %268 = vmatprep.mubr.bf16.mxu0 %v483_v23 }
   0xc   :  { %441 = vmatpush3.bf16.msra.mxu1 %v466_v9  ;;  %411 = vmatprep.subr.bf16.mxu0 %v467_v10 }
   0xd   :  { %442 = vmatprep.subr.bf16.mxu1 %v486_v1 }
   0xf   :  { %412 = vmatpush3.bf16.msra.mxu0 %v468_v11 }
  0x10   :  { %443 = vmatpush3.bf16.msra.mxu1 %v469_v12  ;;  %413 = vmatprep.subr.bf16.mxu0 %v470_v13 }
  0x11   :  { %444 = vmatprep.subr.bf16.mxu1 %v486_v1 }
  0x13   :  { %414 = vmatpush3.bf16.msra.mxu0 %v471_v14 }
  0x14   :  { %445 = vmatpush3.bf16.msra.mxu1 %v472_v15  ;;  %415 = vmatprep.subr.bf16.mxu0 %v473_v16 }
  0x15   :  { %446 = vmatprep.subr.bf16.mxu1 %v486_v1 }
  0x17   :  { %416 = vmatpush3.bf16.msra.mxu0 %v474_v17 }
  0x18   :  { %447 = vmatpush3.bf16.msra.mxu1 %v475_v18  ;;  %417 = vmatprep.subr.bf16.mxu0 %v476_v19 }
  0x19   :  { %448 = vmatprep.subr.bf16.mxu1 %v486_v1 }
  0x1b   :  { %418 = vmatpush3.bf16.msra.mxu0 %v477_v20 }
  0x1c   :  { %449 = vmatpush3.bf16.msra.mxu1 %v478_v21  ;;  %419 = vmatprep.subr.bf16.mxu0 %v479_v22 }
  0x1d   :  { %450 = vmatprep.subr.bf16.mxu1 %v486_v1 }
  0x1f   :  { %420 = vmatpush3.bf16.msra.mxu0 %v480_v24 }
  0x20   :  { %451 = vmatpush3.bf16.msra.mxu1 %v484_v25 }
  0x22   :  { %269 = vmatmul.mubr.bf16.vlgmr.msra.gmra.mrb[0].mxu0 %v481_v26 }
  0x23   :  { %453 = vmatmul.mubr.bf16.vlgmr.msra.gmra.mrb[0].mxu1 %v485_v27 }
  0xf5   :  { %v421_v28 = vpop.f32.mrb[0].mxu0 }
  0xf6   :  { %v422_v29 = vpop.f32.mrb[1].mxu0  ;;  %v311_v31 = vpop.f32.mrb[0].mxu1 }
  0xf7   :  { %v423_v32 = vadd.f32 %v422_v29, %v421_v28  ;;  %v424_v33 = vpop.f32.mrb[2].mxu0  ;;  %v454_v34 = vpop.f32.mrb[1].mxu1 }
  0xf8   :  { %v425_v35 = vpop.f32.mrb[3].mxu0  ;;  %v314_v36 = vpop.f32.mrb[2].mxu1 }
  0xf9   :  { %v271_v37 = vadd.f32 %v423_v32, %v368_v30  ;;  %v426_v38 = vadd.f32 %v425_v35, %v424_v33  ;;  %v455_v39 = vpop.f32.mrb[3].mxu1 }
  0xfb   :  { %v312_v40 = vadd.f32 %v311_v31, %v271_v37  ;;  %v274_v41 = vadd.f32 %v426_v38, %v368_v30 }
  0xfd   :  { %v318_v42 = vmax.f32 %v312_v40, 0.0  ;;  %v315_v43 = vadd.f32 %v314_v36, %v274_v41 }
  0xff   :  { %v342_v44 = vrot.slane %v318_v42, 4  ;;  %v348_v45 = vmul.f32 %v318_v42, %v318_v42  ;;  %v319_v46 = vmax.f32 %v315_v43, 0.0 }
 0x101   :  { %v343_v47 = vadd.f32 %v342_v44, %v318_v42  ;;  %v351_v48 = vrot.slane %v348_v45, 4  ;;  %v403_v49 = vpack.c.bf16 %v319_v46, %v318_v42 }
 0x103   :  { %v344_v50 = vrot.slane %v343_v47, 2  ;;  %v352_v51 = vadd.f32 %v351_v48, %v348_v45  ;;  %404 = vst [vmem:[%s606_s3] sm:$0xff] %v403_v49  }
 0x105   :  { %v345_v52 = vadd.f32 %v344_v50, %v343_v47  ;;  %v353_v53 = vrot.slane %v352_v51, 2 }
 0x107   :  { %v346_v54 = vrot.slane %v345_v52, 1  ;;  %v354_v55 = vadd.f32 %v353_v53, %v352_v51 }
 0x109   :  { %v355_v56 = vrot.slane %v354_v55, 1  ;;  %v347_v57 = vadd.f32 %v346_v54, %v345_v52 }
 0x10b   :  { %v356_v58 = vadd.f32 %v355_v56, %v354_v55 }
 0x10d   :  { %v358_v59 = vsel %vm357_vm1, %v347_v57, %v356_v58 }
 0x10e   :  { %359 = vst [vmem:[%s607_s4] sm:$0x3] %v358_v59 }

// kernel: audio_classifier_forward.15
= control target key start
LH: loop header
LB: loop body
LE: loop exit
PB: predicated region body
PF: predicated region fallthrough
CT: control target
= control target key end

     0   :  { %v36_v3 = vlaneseq  ;;  %v293_v4 = vmov 0.0|0.0   ;;  %vm294_vm0 = vmmov 0   ;;  %v295_v7 = vmov 0.0   ;;  %s403_s0 = inlined_call_operand.vmem [shape: bf16[2,1,128], index: 0, kind: input, shape index: {}]   ;;  %s404_s1 = inlined_call_operand.vmem [shape: f32[1,128], index: 1, kind: input, shape index: {}]   ;;  %s405_s2 = inlined_call_operand.vmem [shape: f32[1,128], index: 2, kind: input, shape index: {}]   ;;  %s406_s3 = inlined_call_operand.vmem [shape: f32[128,2], index: 3, kind: input, shape index: {}]   ;;  %s407_s4 = inlined_call_operand.vmem [shape: f32[1,2], index: 4, kind: input, shape index: {}]   ;;  %s408_s5 = inlined_call_operand.hbm [shape: f32[2,2], index: 5, kind: output, shape index: {}]  }
   0x1   :  { %v63_v0 = vld [vmem:[%s406_s3] sm:$0xff]  ;;  %v64_v1 = vld [vmem:[%s406_s3 + $0x8] sm:$0xff]  ;;  %v65_v2 = vld [vmem:[%s406_s3 + $0x10] sm:$0xff]  ;;  %240 = vmatprep.subr.bf16.mxu0 %v293_v4  ;;  %237 = vmatprep.mubr.msk.f32.mxu0 %vm294_vm0, %v295_v7  ;;  %v296_v8 = vmov 1983009808  }
   0x2   :  { %v241_v5 = vpack.c.bf16 %v64_v1, %v63_v0  ;;  %v66_v6 = vld [vmem:[%s406_s3 + $0x18] sm:$0xff]  ;;  %v34_v9 = vunpack.c.l.s4 %v296_v8  ;;  %v37_v11 = vshrl.u32 %v36_v3, 7  ;;  %v67_v12 = vld [vmem:[%s406_s3 + $0x20] sm:$0xff]  ;;  %v68_v13 = vld [vmem:[%s406_s3 + $0x28] sm:$0xff] }
   0x3   :  { %v244_v10 = vpack.c.bf16 %v66_v6, %v65_v2  ;;  %v247_v15 = vpack.c.bf16 %v68_v13, %v67_v12 }
   0x4   :  { %242 = vmatpush3.bf16.msra.mxu0 %v241_v5  ;;  %v35_v14 = vunpack.c.0.s8 %v34_v9 }
   0x5   :  { %243 = vmatprep.subr.bf16.mxu0 %v293_v4 }
   0x6   :  { %v38_v16 = vsub.s32 %v35_v14, %v37_v11 }
   0x8   :  { %245 = vmatpush3.bf16.msra.mxu0 %v244_v10 }
   0x9   :  { %10 = vsyncpa [#allocation3], 0  ;;  %246 = vmatprep.subr.bf16.mxu0 %v293_v4  ;;  %v69_v17 = vld [vmem:[%s406_s3 + $0x30] sm:$0xff]  ;;  %v70_v18 = vld [vmem:[%s406_s3 + $0x38] sm:$0xff]  ;;  %v90_v43 = vsub.s32 0, %v37_v11  ;;  %vm96_vm1 = vcmask 1041409  }
   0xa   :  { %v185_v19 = vld [vmem:[%s404_s1] ss:$0 sm:$0xff]  ;;  %v250_v20 = vpack.c.bf16 %v70_v18, %v69_v17  ;;  %v72_v22 = vld [vmem:[%s406_s3 + $0x48] sm:$0xff]  ;;  %v22_v25 = vld [vmem:[%s403_s0 + $0x1] sm:$0x1]  ;;  %s297_s7 = smov [#allocation2]  }
   0xb   :  { %v71_v21 = vld [vmem:[%s406_s3 + $0x40] sm:$0xff]  ;;  %v39_v23 = vrot.slane %v185_v19, %v38_v16  ;;  %v24_v29 = vunpack.c.l.bf16 %v22_v25  ;;  %v73_v32 = vld [vmem:[%s406_s3 + $0x50] sm:$0xff]  ;;  %v74_v33 = vld [vmem:[%s406_s3 + $0x58] sm:$0xff]  ;;  %s177_s8 = sshll.u32 %s297_s7, 4  ;;  %vm169_vm2 = vcmask 9216   ;;  %s178_s8 = int_to_ptr.vmem [resolvable:$true] %s177_s8 }
   0xc   :  { %248 = vmatpush3.bf16.msra.mxu0 %v247_v15  ;;  %v21_v24 = vld [vmem:[%s403_s0] sm:$0x1]  ;;  %v253_v27 = vpack.c.bf16 %v72_v22, %v71_v21  ;;  %v256_v34 = vpack.c.bf16 %v74_v33, %v73_v32  ;;  %v76_v39 = vld [vmem:[%s406_s3 + $0x68] sm:$0xff]  ;;  %v77_v44 = vld [vmem:[%s406_s3 + $0x70] sm:$0xff]  ;;  %p274_p1 = scmp.lt.s32.totalorder %s178_s8, %s178_s8 }
   0xd   :  { %249 = vmatprep.subr.bf16.mxu0 %v293_v4  ;;  %v186_v26 = vld [vmem:[%s405_s2] ss:$0 sm:$0xff]  ;;  %v23_v28 = vunpack.c.l.bf16 %v21_v24  ;;  %v40_v30 = vrot.slane %v39_v23, 1  ;;  %v78_v45 = vld [vmem:[%s406_s3 + $0x78] sm:$0xff] }
   0xe   :  { %v57_v31 = vrot.slane %v186_v26, %v38_v16  ;;  %v75_v38 = vld [vmem:[%s406_s3 + $0x60] sm:$0xff]  ;;  %v262_v46 = vpack.c.bf16 %v78_v45, %v77_v44  ;;  %s269_s3 = scalar_lea.vmem %s178_s8, 32 }
   0xf   :  { %v43_v35 = vmul.f32 %v39_v23, %v23_v28  ;;  %v44_v36 = vmul.f32 %v40_v30, %v24_v29  ;;  %v259_v40 = vpack.c.bf16 %v76_v39, %v75_v38  ;;  %v187_v50 = vld [vmem:[%s407_s4] ss:$0 sm:$0xff]  ;;  %p270_p0 = scmp.ne.s32.totalorder %s178_s8, %s269_s3  ;;  %p275_p2 = scmp.lt.s32.totalorder %s269_s3, %s269_s3 }
  0x10   :  { %251 = vmatpush3.bf16.msra.mxu0 %v250_v20  ;;  %v58_v37 = vrot.slane %v57_v31, 1 }
  0x11   :  { %252 = vmatprep.subr.bf16.mxu0 %v293_v4  ;;  %v61_v41 = vadd.f32 %v57_v31, %v43_v35  ;;  %p276_p3 = por %p275_p2, %p274_p1 }
  0x12   :  { %v62_v42 = vadd.f32 %v58_v37, %v44_v36 }
  0x13   :  { %v91_v47 = vrot.slane %v61_v41, %v90_v43  ;;  %p277_p4 = pnand %p276_p3, %p270_p0 }
  0x14   :  { %254 = vmatpush3.bf16.msra.mxu0 %v253_v27  ;;  %v95_v48 = vrot.slane %v62_v42, %v90_v43 }
  0x15   :  { %255 = vmatprep.subr.bf16.mxu0 %v293_v4 }
  0x16   :  { %v97_v49 = vsel %vm96_vm1, %v95_v48, %v91_v47 }
  0x18   :  { %257 = vmatpush3.bf16.msra.mxu0 %v256_v34 }
  0x19   :  { %258 = vmatprep.subr.bf16.mxu0 %v293_v4 }
  0x1c   :  { %260 = vmatpush3.bf16.msra.mxu0 %v259_v40 }
  0x1d   :  { %261 = vmatprep.subr.bf16.mxu0 %v293_v4 }
  0x20   :  { %263 = vmatpush3.bf16.msra.mxu0 %v262_v46 }
  0x23   :  { %238 = vmatmul.mubr.f32.vlgmr.msra.gmra.mrb[0].mxu0 %v97_v49 }
  0xf6   :  { %v165_v51 = vpop.f32.mrb[0].mxu0 }
  0xf7   :  { %v166_v52 = vadd.f32 %v187_v50, %v165_v51  ;;  %v239_v53 = vpop.f32.mrb[1].mxu0 }
  0xf9   :  { %170 = vst.msk [vmem:[#allocation2] sm:$0x3] %vm169_vm2, %v166_v52 }
  0xfa   :  { %280 = shalt.err (!%p277_p4)
}
  0xfb   :  { %s281_s11 = scalar_lea.hbm %s408_s5, 32 }
  0xfc   :  { %p282_p5 = scmp.ne.s32.totalorder %s408_s5, %s281_s11  ;;  %p285_p6 = scmp.lt.u32.totalorder %s281_s11, %s408_s5 }
  0xfe   :  { %p287_p7 = pnand %p285_p6, %p282_p5 }
 0x100   :  { %290 = shalt.err (!%p287_p7)
}
 0x101   :  { %180 = dma.vmem_to_hbm [thread:$0]  %s178_s8, 32, %s408_s5, [#allocation3]  }
 0x102   :  { %291 = dma.done.wait [#allocation3], 32  }
 0x103   :  { %292 = vsyncadd [#allocation3], 4294967264 }
 0x104   :  { %184 = vsyncpa [#allocation3], 1 }

// kernel: audio_classifier_forward.14
= control target key start
LH: loop header
LB: loop body
LE: loop exit
PB: predicated region body
PF: predicated region fallthrough
CT: control target
= control target key end

     0   :  { %v726_v33 = vmov 0.0   ;;  %vm727_vm0 = vmmov 0   ;;  %v512_v63 = vlaneseq  ;;  %vm538_vm2 = vcmask 1040384   ;;  %s897_s1 = inlined_call_operand.vmem [shape: bf16[640,128], index: 1, kind: input, shape index: {}]   ;;  %s898_s0 = inlined_call_operand.vmem [shape: bf16[16,640], index: 0, kind: input, shape index: {}]   ;;  %s899_s2 = inlined_call_operand.vmem [shape: f32[1,128], index: 2, kind: input, shape index: {}]   ;;  %s900_s3 = inlined_call_operand.vmem [shape: bf16[16,128], index: 3, kind: output, shape index: {0}]   ;;  %s901_s4 = inlined_call_operand.vmem [shape: f32[1,2,128], index: 4, kind: output, shape index: {1}]  }
   0x1   :  { %v679_v0 = vld [vmem:[%s897_s1 + $0x40] sm:$0xff]   ;;  %v683_v4 = vld [vmem:[%s897_s1 + $0x48] sm:$0xff]   ;;  %v687_v8 = vld [vmem:[%s897_s1 + $0x50] sm:$0xff]  }
   0x2   :  { %v680_v1 = vld [vmem:[%s897_s1] sm:$0xff]   ;;  %604 = vmatprep.subr.bf16.mxu0 %v679_v0  ;;  %v684_v5 = vld [vmem:[%s897_s1 + $0x8] sm:$0xff]   ;;  %v688_v9 = vld [vmem:[%s897_s1 + $0x10] sm:$0xff]   ;;  %v513_v0 = vshrl.u32 %v512_v63, 7 }
   0x3   :  { %v681_v2 = vld [vmem:[%s897_s1 + $0xc0] sm:$0xff]   ;;  %605 = vmatpush3.bf16.msra.mxu0 %v680_v1  ;;  %v685_v6 = vld [vmem:[%s897_s1 + $0xc8] sm:$0xff]   ;;  %v689_v10 = vld [vmem:[%s897_s1 + $0xd0] sm:$0xff]  }
   0x4   :  { %v682_v3 = vld [vmem:[%s897_s1 + $0x80] sm:$0xff]   ;;  %626 = vmatprep.subr.bf16.mxu1 %v681_v2  ;;  %606 = vmatprep.subr.bf16.mxu0 %v683_v4  ;;  %v686_v7 = vld [vmem:[%s897_s1 + $0x88] sm:$0xff]   ;;  %v690_v11 = vld [vmem:[%s897_s1 + $0x90] sm:$0xff]   ;;  %vm518_vm1 = vcmp.lt.s32.totalorder %v513_v0, 2 }
   0x5   :  { %627 = vmatpush3.bf16.msra.mxu1 %v682_v3  ;;  %v691_v12 = vld [vmem:[%s897_s1 + $0x58] sm:$0xff]   ;;  %v695_v16 = vld [vmem:[%s897_s1 + $0x60] sm:$0xff]   ;;  %v699_v20 = vld [vmem:[%s897_s1 + $0x68] sm:$0xff]  }
   0x6   :  { %628 = vmatprep.subr.bf16.mxu1 %v685_v6  ;;  %v692_v13 = vld [vmem:[%s897_s1 + $0x18] sm:$0xff]   ;;  %v696_v17 = vld [vmem:[%s897_s1 + $0x20] sm:$0xff]   ;;  %v700_v21 = vld [vmem:[%s897_s1 + $0x28] sm:$0xff]  }
   0x7   :  { %607 = vmatpush3.bf16.msra.mxu0 %v684_v5  ;;  %v693_v14 = vld [vmem:[%s897_s1 + $0xd8] sm:$0xff]   ;;  %v697_v18 = vld [vmem:[%s897_s1 + $0xe0] sm:$0xff]   ;;  %v701_v22 = vld [vmem:[%s897_s1 + $0xe8] sm:$0xff]  }
   0x8   :  { %608 = vmatprep.subr.bf16.mxu0 %v687_v8  ;;  %v694_v15 = vld [vmem:[%s897_s1 + $0x98] sm:$0xff]   ;;  %v698_v19 = vld [vmem:[%s897_s1 + $0xa0] sm:$0xff]   ;;  %v702_v23 = vld [vmem:[%s897_s1 + $0xa8] sm:$0xff]  }
   0x9   :  { %629 = vmatpush3.bf16.msra.mxu1 %v686_v7  ;;  %v703_v24 = vld [vmem:[%s897_s1 + $0x70] sm:$0xff]   ;;  %v707_v28 = vld [vmem:[%s897_s1 + $0x78] sm:$0xff]   ;;  %v716_v36 = vld [vmem:[%s898_s0 + $0xc] ss:$20 sps:$4 sm:$0xff]  }
   0xa   :  { %630 = vmatprep.subr.bf16.mxu1 %v689_v10  ;;  %v704_v25 = vld [vmem:[%s897_s1 + $0x30] sm:$0xff]   ;;  %v708_v29 = vld [vmem:[%s897_s1 + $0x38] sm:$0xff]   ;;  %v717_v37 = vld [vmem:[%s897_s1 + $0x100] sm:$0xff]   ;;  %449 = vmatprep.mubr.bf16.mxu1 %v716_v36 }
   0xb   :  { %609 = vmatpush3.bf16.msra.mxu0 %v688_v9  ;;  %v705_v26 = vld [vmem:[%s897_s1 + $0xf0] sm:$0xff]   ;;  %v709_v30 = vld [vmem:[%s897_s1 + $0xf8] sm:$0xff]   ;;  %v718_v38 = vld [vmem:[%s897_s1 + $0x108] sm:$0xff]  }
   0xc   :  { %610 = vmatprep.subr.bf16.mxu0 %v691_v12  ;;  %v706_v27 = vld [vmem:[%s897_s1 + $0xb0] sm:$0xff]   ;;  %v712_v32 = vld [vmem:[%s898_s0 + $0x4] ss:$20 sps:$4 sm:$0xff]   ;;  %v714_v35 = vld [vmem:[%s898_s0 + $0x8] ss:$20 sps:$4 sm:$0xff]  }
   0xd   :  { %631 = vmatpush3.bf16.msra.mxu1 %v690_v11  ;;  %v710_v31 = vld [vmem:[%s898_s0] ss:$20 sps:$4 sm:$0xff]   ;;  %v713_v34 = vld [vmem:[%s897_s1 + $0xb8] sm:$0xff]   ;;  %408 = vmatprep.mubr.bf16.mxu0 %v712_v32  ;;  %v722_v42 = vld [vmem:[%s897_s1 + $0x128] sm:$0xff]  }
   0xe   :  { %632 = vmatprep.subr.bf16.mxu1 %v693_v14  ;;  %v719_v39 = vld [vmem:[%s897_s1 + $0x110] sm:$0xff]   ;;  %v720_v40 = vld [vmem:[%s897_s1 + $0x118] sm:$0xff]   ;;  %v721_v41 = vld [vmem:[%s897_s1 + $0x120] sm:$0xff]  }
   0xf   :  { %611 = vmatpush3.bf16.msra.mxu0 %v692_v13  ;;  %v723_v43 = vld [vmem:[%s897_s1 + $0x130] sm:$0xff]   ;;  %v724_v44 = vld [vmem:[%s897_s1 + $0x138] sm:$0xff]   ;;  %v549_v47 = vld [vmem:[%s899_s2] ss:$0 sm:$0xff] }
  0x10   :  { %612 = vmatprep.subr.bf16.mxu0 %v695_v16  ;;  %v725_v45 = vld [vmem:[%s898_s0 + $0x10] ss:$20 sps:$4 sm:$0xff]  }
  0x11   :  { %633 = vmatpush3.bf16.msra.mxu1 %v694_v15 }
  0x12   :  { %634 = vmatprep.subr.bf16.mxu1 %v697_v18 }
  0x13   :  { %613 = vmatpush3.bf16.msra.mxu0 %v696_v17 }
  0x14   :  { %614 = vmatprep.subr.bf16.mxu0 %v699_v20 }
  0x15   :  { %635 = vmatpush3.bf16.msra.mxu1 %v698_v19 }
  0x16   :  { %636 = vmatprep.subr.bf16.mxu1 %v701_v22 }
  0x17   :  { %615 = vmatpush3.bf16.msra.mxu0 %v700_v21 }
  0x18   :  { %616 = vmatprep.subr.bf16.mxu0 %v703_v24 }
  0x19   :  { %637 = vmatpush3.bf16.msra.mxu1 %v702_v23 }
  0x1a   :  { %638 = vmatprep.subr.bf16.mxu1 %v705_v26 }
  0x1b   :  { %617 = vmatpush3.bf16.msra.mxu0 %v704_v25 }
  0x1c   :  { %618 = vmatprep.subr.bf16.mxu0 %v707_v28 }
  0x1d   :  { %639 = vmatpush3.bf16.msra.mxu1 %v706_v27 }
  0x1e   :  { %640 = vmatprep.subr.bf16.mxu1 %v709_v30 }
  0x1f   :  { %619 = vmatpush3.bf16.msra.mxu0 %v708_v29 }
  0x20   :  { %657 = vmatprep.subr.bf16.mxu0 %v726_v33 }
  0x21   :  { %641 = vmatpush3.bf16.msra.mxu1 %v713_v34 }
  0x22   :  { %409 = vmatmul.mubr.bf16.vlgmr.msra.gmra.mrb[0].mxu0 %v710_v31 }
  0x23   :  { %673 = vmatprep.mubr.msk.bf16.mxu0 %vm727_vm0, %v726_v33  ;;  %658 = vmatpush3.bf16.msra.mxu0 %v717_v37 }
  0x24   :  { %450 = vmatmul.mubr.bf16.vlgmr.msra.gmra.mrb[0].mxu1 %v714_v35  ;;  %659 = vmatprep.subr.bf16.mxu0 %v726_v33 }
  0x27   :  { %660 = vmatpush3.bf16.msra.mxu0 %v718_v38 }
  0x28   :  { %661 = vmatprep.subr.bf16.mxu0 %v726_v33 }
  0x2b   :  { %662 = vmatpush3.bf16.msra.mxu0 %v719_v39 }
  0x2c   :  { %663 = vmatprep.subr.bf16.mxu0 %v726_v33 }
  0x2f   :  { %664 = vmatpush3.bf16.msra.mxu0 %v720_v40 }
  0x30   :  { %665 = vmatprep.subr.bf16.mxu0 %v726_v33 }
  0x33   :  { %666 = vmatpush3.bf16.msra.mxu0 %v721_v41 }
  0x34   :  { %667 = vmatprep.subr.bf16.mxu0 %v726_v33 }
  0x37   :  { %668 = vmatpush3.bf16.msra.mxu0 %v722_v42 }
  0x38   :  { %669 = vmatprep.subr.bf16.mxu0 %v726_v33 }
  0x3b   :  { %670 = vmatpush3.bf16.msra.mxu0 %v723_v43 }
  0x3c   :  { %671 = vmatprep.subr.bf16.mxu0 %v726_v33 }
  0x3f   :  { %672 = vmatpush3.bf16.msra.mxu0 %v724_v44 }
  0x42   :  { %674 = vmatmul.mubr.bf16.vlgmr.msra.gmra.mrb[4].mxu0 %v725_v45 }
  0xf5   :  { %v620_v46 = vpop.f32.mrb[0].mxu0 }
  0xf6   :  { %v621_v48 = vpop.f32.mrb[1].mxu0 }
  0xf7   :  { %v622_v49 = vadd.f32 %v621_v48, %v620_v46  ;;  %v623_v50 = vpop.f32.mrb[2].mxu0  ;;  %v642_v51 = vpop.f32.mrb[0].mxu1 }
  0xf8   :  { %v624_v52 = vpop.f32.mrb[3].mxu0  ;;  %v643_v55 = vpop.f32.mrb[1].mxu1 }
  0xf9   :  { %v411_v53 = vadd.f32 %v622_v49, %v549_v47  ;;  %v625_v54 = vadd.f32 %v624_v52, %v623_v50  ;;  %v644_v56 = vadd.f32 %v643_v55, %v642_v51  ;;  %v645_v57 = vpop.f32.mrb[2].mxu1 }
  0xfa   :  { %v646_v59 = vpop.f32.mrb[3].mxu1 }
  0xfb   :  { %v414_v58 = vadd.f32 %v625_v54, %v549_v47  ;;  %v647_v60 = vadd.f32 %v646_v59, %v645_v57  ;;  %v452_v61 = vadd.f32 %v644_v56, %v411_v53 }
  0xfd   :  { %v455_v62 = vadd.f32 %v647_v60, %v414_v58 }
 0x115   :  { %v492_v1 = vpop.f32.mrb[4].mxu0 }
 0x116   :  { %v493_v2 = vadd.f32 %v492_v1, %v452_v61  ;;  %v675_v3 = vpop.f32.mrb[5].mxu0 }
 0x117   :  { %v495_v4 = vpop.f32.mrb[6].mxu0 }
 0x118   :  { %v499_v5 = vmax.f32 %v493_v2, 0.0  ;;  %v496_v6 = vadd.f32 %v495_v4, %v455_v62  ;;  %v676_v7 = vpop.f32.mrb[7].mxu0 }
 0x11a   :  { %v520_v8 = vsel %vm518_vm1, %v499_v5, 0.0  ;;  %v500_v9 = vmax.f32 %v496_v6, 0.0 }
 0x11b   :  { %v523_v10 = vrot.slane %v520_v8, 4  ;;  %v529_v11 = vmul.f32 %v520_v8, %v520_v8 }
 0x11c   :  { %v602_v12 = vpack.c.bf16 %v500_v9, %v499_v5 }
 0x11d   :  { %v524_v13 = vadd.f32 %v523_v10, %v520_v8  ;;  %v532_v14 = vrot.slane %v529_v11, 4 }
 0x11e   :  { %603 = vst [vmem:[%s900_s3] sm:$0xff] %v602_v12  }
 0x11f   :  { %v525_v15 = vrot.slane %v524_v13, 2  ;;  %v533_v16 = vadd.f32 %v532_v14, %v529_v11 }
 0x121   :  { %v526_v17 = vadd.f32 %v525_v15, %v524_v13  ;;  %v534_v18 = vrot.slane %v533_v16, 2 }
 0x123   :  { %v527_v19 = vrot.slane %v526_v17, 1  ;;  %v535_v20 = vadd.f32 %v534_v18, %v533_v16 }
 0x125   :  { %v536_v21 = vrot.slane %v535_v20, 1  ;;  %v528_v22 = vadd.f32 %v527_v19, %v526_v17 }
 0x127   :  { %v537_v23 = vadd.f32 %v536_v21, %v535_v20 }
 0x129   :  { %v539_v24 = vsel %vm538_vm2, %v528_v22, %v537_v23 }
 0x12a   :  { %540 = vst [vmem:[%s901_s4] sm:$0x3] %v539_v24 }

</bundles_post_ra>
